<compile_context>
chip_gen: v5e
topology: v5e:2x2
jax: 0.10.0
libtpu: 0.0.40
codegen_flags: <defaults>
</compile_context>

<pallas_src>
import jax
import jax.numpy as jnp
from jax.experimental import pallas as pl
from jax.experimental.pallas import tpu as pltpu
import functools


# ------------------------------ fused kernel ---------------------------------

def decoder_kernel(z_ref, c_ref,
                   W1z_ref, b1z_ref,
                   W1c_ref, b1c_ref,
                   W1czz_ref, W1czc_ref, b1cz_ref,
                   gate_ref, intercept_ref, b2_ref, W2_ref,
                   out_ref, *, n_covariates):
    """One output tile: recompute first layer, then T gated per-term matmuls."""
    f32 = jnp.float32
    z = z_ref[...]                                            # (B, Dz)  f32
    c = c_ref[...]                                            # (B, n_cov) f32
    g = gate_ref[...]                                         # (T, tn)  f32

    # ---- first layer (tiny; recomputed per tile) -----------------------------
    # mapping_z
    h_z = jnp.tanh(jnp.dot(z, W1z_ref[...], preferred_element_type=f32)
                   + b1z_ref[...])                            # (B, H)

    # mappings_c[j] (input dim 1 -> broadcast multiply), all j at once
    h_c = jnp.tanh(c[:, :, None] * W1c_ref[...][None, :, :]
                   + b1c_ref[...][None, :, :])                # (B, n_cov, H)

    # mappings_cz[j] on concat([z, c_j]), realized as split matmul, all j at once
    zz = jax.lax.dot_general(z, W1czz_ref[...],
                             (((1,), (1,)), ((), ())),
                             preferred_element_type=f32)      # (B, n_cov, H)
    h_cz = jnp.tanh(zz + c[:, :, None] * W1czc_ref[...][None, :, :]
                    + b1cz_ref[...][None, :, :])              # (B, n_cov, H)

    # ---- second layer: per-term bf16 matmuls, gates applied to f32 output ----
    # term order (must match packing): [z, c_0..c_{n-1}, cz_0..cz_{n-1}]
    acc = g[0:1, :] * jnp.dot(h_z.astype(jnp.bfloat16), W2_ref[0],
                              preferred_element_type=f32)     # (B, tn)
    for j in range(n_covariates):
        tc = 1 + j
        acc = acc + g[tc:tc + 1, :] * jnp.dot(
            h_c[:, j, :].astype(jnp.bfloat16), W2_ref[tc],
            preferred_element_type=f32)
        ti = 1 + n_covariates + j
        acc = acc + g[ti:ti + 1, :] * jnp.dot(
            h_cz[:, j, :].astype(jnp.bfloat16), W2_ref[ti],
            preferred_element_type=f32)

    # intercept + sum_t w_t * b2_t (gated second-layer biases)
    bias = intercept_ref[...] + jnp.sum(g * b2_ref[...], axis=0, keepdims=True)
    out_ref[...] = acc + bias


# --------------------------------- packing ------------------------------------

def _choose_tile(D, tn_max=512, lane_pad=256):
    """Pad D up to a lane-dense multiple and pick a tile width.

    Keeps >= 2 grid steps whenever possible (two TensorCores on v7x) and the
    output last dim a multiple of 128 (prefer 256) to avoid masked stores.
    """
    D_pad = pl.cdiv(D, lane_pad) * lane_pad
    if D_pad <= tn_max:
        if D_pad >= 256 and (D_pad // 2) % 128 == 0:
            tn = D_pad // 2                   # 2 steps -> both v7x cores busy
        else:
            tn = D_pad                        # single lane-dense tile
    else:
        tn = tn_max
        D_pad = pl.cdiv(D_pad, tn) * tn       # multiple of tn
    return tn, D_pad


def pack_params(params, *, tn_max=512):
    """One-time packing: stack second-layer weights/biases along the term axis
    (T, H, D_pad), pad the output dim, and cast the streamed weights to bf16."""
    H, D = params["W2_z"].shape
    n_cov = params["W2_c"].shape[0]
    tn, D_pad = _choose_tile(D, tn_max)
    pad = D_pad - D

    def pad_d(x):
        if pad == 0:
            return x
        cfg = [(0, 0)] * (x.ndim - 1) + [(0, pad)]
        return jnp.pad(x, cfg)

    # term order: [z, c_0..c_{n-1}, cz_0..cz_{n-1}]  (must match decoder_kernel)
    W2_all = jnp.concatenate(
        [params["W2_z"][None], params["W2_c"], params["W2_cz"]], axis=0)   # (T,H,D)
    b2_all = jnp.concatenate(
        [params["b2_z"], params["b2_c"], params["b2_cz"]], axis=0)         # (T,D)

    return {
        # first-layer params (small, stay f32)
        "W1_z": params["W1_z"], "b1_z": params["b1_z"],
        "W1_c": params["W1_c"], "b1_c": params["b1_c"],
        "W1_cz_z": params["W1_cz_z"], "W1_cz_c": params["W1_cz_c"],
        "b1_cz": params["b1_cz"],
        # streamed second-layer params (layout fixed at pack time; no in-kernel reshape)
        "W2_all": pad_d(W2_all).astype(jnp.bfloat16),      # (T, H, D_pad) bf16
        "b2_all": pad_d(b2_all).astype(jnp.float32),       # (T, D_pad)    f32
        "intercept": pad_d(params["intercept"]).astype(jnp.float32),   # (1, D_pad)
        # meta
        "D": D, "D_pad": D_pad, "tn": tn, "H": H, "n_cov": n_cov,
    }


# --------------------------------- wrapper -------------------------------------

def decoder_forward(z, c, packed, gates):
    B, Dz = z.shape
    n_cov = packed["n_cov"]
    H = packed["H"]
    T = 1 + 2 * n_cov
    D, D_pad, tn = packed["D"], packed["D_pad"], packed["tn"]
    n_steps = D_pad // tn

    wz, wc, wcz = gates
    gate_all = jnp.concatenate([wz, wc, wcz], axis=0)            # (T, D) f32
    if D_pad != D:
        gate_all = jnp.pad(gate_all, ((0, 0), (0, D_pad - D)))

    full = lambda shape: pl.BlockSpec(shape, lambda i: (0,) * len(shape))

    cost = pl.CostEstimate(
        flops=2 * B * T * H * D_pad                                # second layer
              + n_steps * 2 * B * Dz * H * (1 + n_cov)             # first-layer recompute
              + 3 * B * D_pad,                                     # gating + bias adds
        transcendentals=n_steps * B * T * H,                       # tanh per tile
        bytes_accessed=2 * T * H * D_pad                           # W2 (bf16)
                       + 4 * (2 * T + 1) * D_pad                   # gates, b2, intercept
                       + 4 * B * D_pad                             # output
                       + n_steps * 4 * B * (Dz + n_cov),           # z, c per step
    )

    out = pl.pallas_call(
        functools.partial(decoder_kernel, n_covariates=n_cov),
        out_shape=jax.ShapeDtypeStruct((B, D_pad), jnp.float32),
        grid_spec=pltpu.PrefetchScalarGridSpec(
            num_scalar_prefetch=0,
            grid=(n_steps,),
            in_specs=[
                full((B, Dz)),                                   # z
                full((B, n_cov)),                                # c
                full((Dz, H)),                                   # W1_z
                full((1, H)),                                    # b1_z
                full((n_cov, H)),                                # W1_c (input dim 1)
                full((n_cov, H)),                                # b1_c
                full((n_cov, Dz, H)),                            # W1_cz (z part)
                full((n_cov, H)),                                # W1_cz (c part)
                full((n_cov, H)),                                # b1_cz
                pl.BlockSpec((T, tn), lambda i: (0, i)),         # gates      f32
                pl.BlockSpec((1, tn), lambda i: (0, i)),         # intercept  f32
                pl.BlockSpec((T, tn), lambda i: (0, i)),         # b2_all     f32
                pl.BlockSpec((T, H, tn), lambda i: (0, 0, i)),   # W2_all     bf16
            ],
            out_specs=pl.BlockSpec((B, tn), lambda i: (0, i)),
        ),
        compiler_params=pltpu.CompilerParams(
            dimension_semantics=("parallel",)),
        cost_estimate=cost,
    )(z, c,
      packed["W1_z"], packed["b1_z"],
      packed["W1_c"], packed["b1_c"],
      packed["W1_cz_z"], packed["W1_cz_c"], packed["b1_cz"],
      gate_all, packed["intercept"], packed["b2_all"], packed["W2_all"])

    return out[:, :D] if D_pad != D else out


# ------------------------ parameter / gate construction -----------------------

def init_params(key, *, Dz, n_cov, H, D):
    ks = jax.random.split(key, 10)
    n = lambda k, s: (0.1 * jax.random.normal(k, s)).astype(jnp.float32)
    return {
        "intercept": jnp.zeros((1, D), jnp.float32),     # nn.Parameter(zeros)
        "W1_z": n(ks[0], (Dz, H)),
        "b1_z": jnp.zeros((1, H), jnp.float32),
        "W2_z": n(ks[1], (H, D)),
        "b2_z": jnp.zeros((1, D), jnp.float32),
        "W1_c": n(ks[2], (n_cov, H)),                    # input dim 1
        "b1_c": jnp.zeros((n_cov, H), jnp.float32),
        "W2_c": n(ks[3], (n_cov, H, D)),
        "b2_c": jnp.zeros((n_cov, D), jnp.float32),
        "W1_cz_z": n(ks[4], (n_cov, Dz, H)),             # weight rows for z
        "W1_cz_c": n(ks[5], (n_cov, H)),                 # weight row for c_j
        "b1_cz": jnp.zeros((n_cov, H), jnp.float32),
        "W2_cz": n(ks[6], (n_cov, H, D)),
        "b2_cz": jnp.zeros((n_cov, D), jnp.float32),
    }


def rsample_relaxed_bernoulli(key, temperature, logits):
    # RelaxedBernoulli rsample: sigmoid((logits + logistic_noise) / temperature)
    u = jax.random.uniform(key, logits.shape, minval=1e-6, maxval=1.0 - 1e-6)
    noise = jnp.log(u) - jnp.log1p(-u)
    return jax.nn.sigmoid((logits + noise) / temperature)


def make_gates(key, *, n_cov, D, temperature=1.0):
    qlogits_z = 3.0 * jnp.ones((1, D), jnp.float32)        # as in __init__
    qlogits_c = 3.0 * jnp.ones((n_cov, D), jnp.float32)
    qlogits_cz = 2.0 * jnp.ones((n_cov, D), jnp.float32)
    kz, kc, kcz = jax.random.split(key, 3)
    wz = rsample_relaxed_bernoulli(kz, temperature, qlogits_z)
    wc = rsample_relaxed_bernoulli(kc, temperature, qlogits_c)
    wcz = rsample_relaxed_bernoulli(kcz, temperature, qlogits_cz)
    return wz, wc, wcz


# ------------------------------ pure-JAX reference ----------------------------

def ref_forward(z, c, params, gates):
    wz, wc, wcz = gates
    n_cov = c.shape[1]
    h_z = jnp.tanh(z @ params["W1_z"] + params["b1_z"])
    out = params["intercept"] + wz * (h_z @ params["W2_z"] + params["b2_z"])
    for j in range(n_cov):
        cj = c[:, j:j + 1]
        h_c = jnp.tanh(cj * params["W1_c"][j:j + 1] + params["b1_c"][j:j + 1])
        out = out + wc[j:j + 1] * (h_c @ params["W2_c"][j] + params["b2_c"][j:j + 1])
        h_cz = jnp.tanh(z @ params["W1_cz_z"][j]
                        + cj * params["W1_cz_c"][j:j + 1]
                        + params["b1_cz"][j:j + 1])
        out = out + wcz[j:j + 1] * (h_cz @ params["W2_cz"][j] + params["b2_cz"][j:j + 1])
    return out


# ---------------------------------- main ---------------------------------------

if __name__ == "__main__":
    B, Dz, n_cov, H, D = 8, 4, 2, 32, 1024   # D=1024 -> tn=512 -> 2 parallel tiles

    key = jax.random.PRNGKey(0)
    k_z, k_c, k_p, k_g = jax.random.split(key, 4)

    z = jax.random.normal(k_z, (B, Dz), jnp.float32)
    c = jax.random.normal(k_c, (B, n_cov), jnp.float32)
    params = init_params(k_p, Dz=Dz, n_cov=n_cov, H=H, D=D)
    gates = make_gates(k_g, n_cov=n_cov, D=D)

    packed = pack_params(params, tn_max=512)     # one-time weight packing
    out = decoder_forward(z, c, packed, gates)
    out = jax.block_until_ready(out)

    expected = ref_forward(z, c, params, gates)
    assert out.shape == (B, D)
    max_err = float(jnp.max(jnp.abs(out - expected)))
    # bf16 weight/activation streaming with f32 accumulation -> looser tolerance
    assert jnp.allclose(out, expected, atol=5e-2, rtol=5e-2), \
        f"mismatch vs reference, max abs err = {max_err}"

    # TODO(synk): loglik / KL / penalty / integral terms (training loss) are not
    # part of forward() and are left out of the kernel.
    print("KERNEL_OK")
</pallas_src>

<mosaic_0001>
module attributes {stable_mosaic.version = 11 : i64} {
  func.func @decoder_kernel(%arg0: i32, %arg1: memref<8x4xf32, #tpu.memory_space<vmem>>, %arg2: memref<8x2xf32, #tpu.memory_space<vmem>>, %arg3: memref<4x32xf32, #tpu.memory_space<vmem>>, %arg4: memref<1x32xf32, #tpu.memory_space<vmem>>, %arg5: memref<2x32xf32, #tpu.memory_space<vmem>>, %arg6: memref<2x32xf32, #tpu.memory_space<vmem>>, %arg7: memref<2x4x32xf32, #tpu.memory_space<vmem>>, %arg8: memref<2x32xf32, #tpu.memory_space<vmem>>, %arg9: memref<2x32xf32, #tpu.memory_space<vmem>>, %arg10: memref<5x512xf32, #tpu.memory_space<vmem>>, %arg11: memref<1x512xf32, #tpu.memory_space<vmem>>, %arg12: memref<5x512xf32, #tpu.memory_space<vmem>>, %arg13: memref<5x32x512xbf16, #tpu.memory_space<vmem>>, %arg14: memref<8x512xf32, #tpu.memory_space<vmem>>) attributes {dimension_semantics = [#tpu.dimension_semantics<parallel>], iteration_bounds = array<i64: 2>, scalar_prefetch = 0 : i64, scratch_operands = 0 : i64, tpu.core_type = #tpu.core_type<tc>, window_params = [{pipeline_mode = #tpu.pipeline_mode<synchronous>, transform_indices = @transform_0, window_bounds = array<i64: 8, 4>}, {pipeline_mode = #tpu.pipeline_mode<synchronous>, transform_indices = @transform_1, window_bounds = array<i64: 8, 2>}, {pipeline_mode = #tpu.pipeline_mode<synchronous>, transform_indices = @transform_2, window_bounds = array<i64: 4, 32>}, {pipeline_mode = #tpu.pipeline_mode<synchronous>, transform_indices = @transform_3, window_bounds = array<i64: 1, 32>}, {pipeline_mode = #tpu.pipeline_mode<synchronous>, transform_indices = @transform_4, window_bounds = array<i64: 2, 32>}, {pipeline_mode = #tpu.pipeline_mode<synchronous>, transform_indices = @transform_5, window_bounds = array<i64: 2, 32>}, {pipeline_mode = #tpu.pipeline_mode<synchronous>, transform_indices = @transform_6, window_bounds = array<i64: 2, 4, 32>}, {pipeline_mode = #tpu.pipeline_mode<synchronous>, transform_indices = @transform_7, window_bounds = array<i64: 2, 32>}, {pipeline_mode = #tpu.pipeline_mode<synchronous>, transform_indices = @transform_8, window_bounds = array<i64: 2, 32>}, {transform_indices = @transform_9, window_bounds = array<i64: 5, 512>}, {transform_indices = @transform_10, window_bounds = array<i64: 1, 512>}, {transform_indices = @transform_11, window_bounds = array<i64: 5, 512>}, {transform_indices = @transform_12, window_bounds = array<i64: 5, 32, 512>}, {transform_indices = @transform_13, window_bounds = array<i64: 8, 512>}]} {
    %c0 = arith.constant 0 : index
    %c0_0 = arith.constant 0 : index
    %0 = vector.load %arg1[%c0, %c0_0] : memref<8x4xf32, #tpu.memory_space<vmem>>, vector<8x4xf32>
    %c0_1 = arith.constant 0 : index
    %c0_2 = arith.constant 0 : index
    %1 = vector.load %arg2[%c0_1, %c0_2] : memref<8x2xf32, #tpu.memory_space<vmem>>, vector<8x2xf32>
    %c0_3 = arith.constant 0 : index
    %c0_4 = arith.constant 0 : index
    %2 = vector.load %arg10[%c0_3, %c0_4] : memref<5x512xf32, #tpu.memory_space<vmem>>, vector<5x512xf32>
    %c0_5 = arith.constant 0 : index
    %c0_6 = arith.constant 0 : index
    %3 = vector.load %arg3[%c0_5, %c0_6] : memref<4x32xf32, #tpu.memory_space<vmem>>, vector<4x32xf32>
    %cst = arith.constant dense<0.000000e+00> : vector<8x32xf32>
    %4 = tpu.matmul %0, %3, %cst {dimension_numbers = #tpu.dot_dimension_numbers<[1], [0], [0], [1], [0, 0, 1, 1], [], []>} : vector<8x4xf32>, vector<4x32xf32>, vector<8x32xf32> -> vector<8x32xf32>
    %c0_7 = arith.constant 0 : index
    %c0_8 = arith.constant 0 : index
    %5 = vector.load %arg4[%c0_7, %c0_8] : memref<1x32xf32, #tpu.memory_space<vmem>>, vector<1x32xf32>
    %6 = vector.broadcast %5 : vector<1x32xf32> to vector<8x32xf32>
    %7 = arith.addf %4, %6 : vector<8x32xf32>
    %8 = math.tanh %7 : vector<8x32xf32>
    %9 = vector.shape_cast %1 : vector<8x2xf32> to vector<8x2x1xf32>
    %c0_9 = arith.constant 0 : index
    %c0_10 = arith.constant 0 : index
    %10 = vector.load %arg5[%c0_9, %c0_10] : memref<2x32xf32, #tpu.memory_space<vmem>>, vector<2x32xf32>
    %11 = vector.shape_cast %10 : vector<2x32xf32> to vector<1x2x32xf32>
    %12 = vector.broadcast %9 : vector<8x2x1xf32> to vector<8x2x32xf32>
    %13 = vector.broadcast %11 : vector<1x2x32xf32> to vector<8x2x32xf32>
    %14 = arith.mulf %12, %13 : vector<8x2x32xf32>
    %c0_11 = arith.constant 0 : index
    %c0_12 = arith.constant 0 : index
    %15 = vector.load %arg6[%c0_11, %c0_12] : memref<2x32xf32, #tpu.memory_space<vmem>>, vector<2x32xf32>
    %16 = vector.shape_cast %15 : vector<2x32xf32> to vector<1x2x32xf32>
    %17 = vector.broadcast %16 : vector<1x2x32xf32> to vector<8x2x32xf32>
    %18 = arith.addf %14, %17 : vector<8x2x32xf32>
    %19 = math.tanh %18 : vector<8x2x32xf32>
    %c0_13 = arith.constant 0 : index
    %c0_14 = arith.constant 0 : index
    %c0_15 = arith.constant 0 : index
    %20 = vector.load %arg7[%c0_13, %c0_14, %c0_15] : memref<2x4x32xf32, #tpu.memory_space<vmem>>, vector<2x4x32xf32>
    %cst_16 = arith.constant dense<0.000000e+00> : vector<8x2x32xf32>
    %21 = tpu.matmul %0, %20, %cst_16 {dimension_numbers = #tpu.dot_dimension_numbers<[1], [1], [0], [0, 2], [0, 0, 1, 0, 1, 2], [], []>} : vector<8x4xf32>, vector<2x4x32xf32>, vector<8x2x32xf32> -> vector<8x2x32xf32>
    %22 = vector.shape_cast %1 : vector<8x2xf32> to vector<8x2x1xf32>
    %c0_17 = arith.constant 0 : index
    %c0_18 = arith.constant 0 : index
    %23 = vector.load %arg8[%c0_17, %c0_18] : memref<2x32xf32, #tpu.memory_space<vmem>>, vector<2x32xf32>
    %24 = vector.shape_cast %23 : vector<2x32xf32> to vector<1x2x32xf32>
    %25 = vector.broadcast %22 : vector<8x2x1xf32> to vector<8x2x32xf32>
    %26 = vector.broadcast %24 : vector<1x2x32xf32> to vector<8x2x32xf32>
    %27 = arith.mulf %25, %26 : vector<8x2x32xf32>
    %28 = arith.addf %21, %27 : vector<8x2x32xf32>
    %c0_19 = arith.constant 0 : index
    %c0_20 = arith.constant 0 : index
    %29 = vector.load %arg9[%c0_19, %c0_20] : memref<2x32xf32, #tpu.memory_space<vmem>>, vector<2x32xf32>
    %30 = vector.shape_cast %29 : vector<2x32xf32> to vector<1x2x32xf32>
    %31 = vector.broadcast %30 : vector<1x2x32xf32> to vector<8x2x32xf32>
    %32 = arith.addf %28, %31 : vector<8x2x32xf32>
    %33 = math.tanh %32 : vector<8x2x32xf32>
    %34 = vector.extract_strided_slice %2 {offsets = [0, 0], sizes = [1, 512], strides = [1, 1]} : vector<5x512xf32> to vector<1x512xf32>
    %35 = arith.truncf %8 : vector<8x32xf32> to vector<8x32xbf16>
    %c0_21 = arith.constant 0 : index
    %c0_22 = arith.constant 0 : index
    %c0_23 = arith.constant 0 : index
    %36 = vector.load %arg13[%c0_21, %c0_22, %c0_23] : memref<5x32x512xbf16, #tpu.memory_space<vmem>>, vector<1x32x512xbf16>
    %37 = vector.shape_cast %36 : vector<1x32x512xbf16> to vector<32x512xbf16>
    %cst_24 = arith.constant dense<0.000000e+00> : vector<8x512xf32>
    %38 = tpu.matmul %35, %37, %cst_24 {dimension_numbers = #tpu.dot_dimension_numbers<[1], [0], [0], [1], [0, 0, 1, 1], [], []>} : vector<8x32xbf16>, vector<32x512xbf16>, vector<8x512xf32> -> vector<8x512xf32>
    %39 = vector.broadcast %34 : vector<1x512xf32> to vector<8x512xf32>
    %40 = arith.mulf %39, %38 : vector<8x512xf32>
    %41 = vector.extract_strided_slice %2 {offsets = [1, 0], sizes = [1, 512], strides = [1, 1]} : vector<5x512xf32> to vector<1x512xf32>
    %42 = vector.extract_strided_slice %19 {offsets = [0, 0, 0], sizes = [8, 1, 32], strides = [1, 1, 1]} : vector<8x2x32xf32> to vector<8x1x32xf32>
    %43 = vector.shape_cast %42 : vector<8x1x32xf32> to vector<8x32xf32>
    %44 = arith.truncf %43 : vector<8x32xf32> to vector<8x32xbf16>
    %c1 = arith.constant 1 : index
    %c0_25 = arith.constant 0 : index
    %c0_26 = arith.constant 0 : index
    %45 = vector.load %arg13[%c1, %c0_25, %c0_26] : memref<5x32x512xbf16, #tpu.memory_space<vmem>>, vector<1x32x512xbf16>
    %46 = vector.shape_cast %45 : vector<1x32x512xbf16> to vector<32x512xbf16>
    %cst_27 = arith.constant dense<0.000000e+00> : vector<8x512xf32>
    %47 = tpu.matmul %44, %46, %cst_27 {dimension_numbers = #tpu.dot_dimension_numbers<[1], [0], [0], [1], [0, 0, 1, 1], [], []>} : vector<8x32xbf16>, vector<32x512xbf16>, vector<8x512xf32> -> vector<8x512xf32>
    %48 = vector.broadcast %41 : vector<1x512xf32> to vector<8x512xf32>
    %49 = arith.mulf %48, %47 : vector<8x512xf32>
    %50 = arith.addf %40, %49 : vector<8x512xf32>
    %51 = vector.extract_strided_slice %2 {offsets = [3, 0], sizes = [1, 512], strides = [1, 1]} : vector<5x512xf32> to vector<1x512xf32>
    %52 = vector.extract_strided_slice %33 {offsets = [0, 0, 0], sizes = [8, 1, 32], strides = [1, 1, 1]} : vector<8x2x32xf32> to vector<8x1x32xf32>
    %53 = vector.shape_cast %52 : vector<8x1x32xf32> to vector<8x32xf32>
    %54 = arith.truncf %53 : vector<8x32xf32> to vector<8x32xbf16>
    %c3 = arith.constant 3 : index
    %c0_28 = arith.constant 0 : index
    %c0_29 = arith.constant 0 : index
    %55 = vector.load %arg13[%c3, %c0_28, %c0_29] : memref<5x32x512xbf16, #tpu.memory_space<vmem>>, vector<1x32x512xbf16>
    %56 = vector.shape_cast %55 : vector<1x32x512xbf16> to vector<32x512xbf16>
    %cst_30 = arith.constant dense<0.000000e+00> : vector<8x512xf32>
    %57 = tpu.matmul %54, %56, %cst_30 {dimension_numbers = #tpu.dot_dimension_numbers<[1], [0], [0], [1], [0, 0, 1, 1], [], []>} : vector<8x32xbf16>, vector<32x512xbf16>, vector<8x512xf32> -> vector<8x512xf32>
    %58 = vector.broadcast %51 : vector<1x512xf32> to vector<8x512xf32>
    %59 = arith.mulf %58, %57 : vector<8x512xf32>
    %60 = arith.addf %50, %59 : vector<8x512xf32>
    %61 = vector.extract_strided_slice %2 {offsets = [2, 0], sizes = [1, 512], strides = [1, 1]} : vector<5x512xf32> to vector<1x512xf32>
    %62 = vector.extract_strided_slice %19 {offsets = [0, 1, 0], sizes = [8, 1, 32], strides = [1, 1, 1]} : vector<8x2x32xf32> to vector<8x1x32xf32>
    %63 = vector.shape_cast %62 : vector<8x1x32xf32> to vector<8x32xf32>
    %64 = arith.truncf %63 : vector<8x32xf32> to vector<8x32xbf16>
    %c2 = arith.constant 2 : index
    %c0_31 = arith.constant 0 : index
    %c0_32 = arith.constant 0 : index
    %65 = vector.load %arg13[%c2, %c0_31, %c0_32] : memref<5x32x512xbf16, #tpu.memory_space<vmem>>, vector<1x32x512xbf16>
    %66 = vector.shape_cast %65 : vector<1x32x512xbf16> to vector<32x512xbf16>
    %cst_33 = arith.constant dense<0.000000e+00> : vector<8x512xf32>
    %67 = tpu.matmul %64, %66, %cst_33 {dimension_numbers = #tpu.dot_dimension_numbers<[1], [0], [0], [1], [0, 0, 1, 1], [], []>} : vector<8x32xbf16>, vector<32x512xbf16>, vector<8x512xf32> -> vector<8x512xf32>
    %68 = vector.broadcast %61 : vector<1x512xf32> to vector<8x512xf32>
    %69 = arith.mulf %68, %67 : vector<8x512xf32>
    %70 = arith.addf %60, %69 : vector<8x512xf32>
    %71 = vector.extract_strided_slice %2 {offsets = [4, 0], sizes = [1, 512], strides = [1, 1]} : vector<5x512xf32> to vector<1x512xf32>
    %72 = vector.extract_strided_slice %33 {offsets = [0, 1, 0], sizes = [8, 1, 32], strides = [1, 1, 1]} : vector<8x2x32xf32> to vector<8x1x32xf32>
    %73 = vector.shape_cast %72 : vector<8x1x32xf32> to vector<8x32xf32>
    %74 = arith.truncf %73 : vector<8x32xf32> to vector<8x32xbf16>
    %c4 = arith.constant 4 : index
    %c0_34 = arith.constant 0 : index
    %c0_35 = arith.constant 0 : index
    %75 = vector.load %arg13[%c4, %c0_34, %c0_35] : memref<5x32x512xbf16, #tpu.memory_space<vmem>>, vector<1x32x512xbf16>
    %76 = vector.shape_cast %75 : vector<1x32x512xbf16> to vector<32x512xbf16>
    %cst_36 = arith.constant dense<0.000000e+00> : vector<8x512xf32>
    %77 = tpu.matmul %74, %76, %cst_36 {dimension_numbers = #tpu.dot_dimension_numbers<[1], [0], [0], [1], [0, 0, 1, 1], [], []>} : vector<8x32xbf16>, vector<32x512xbf16>, vector<8x512xf32> -> vector<8x512xf32>
    %78 = vector.broadcast %71 : vector<1x512xf32> to vector<8x512xf32>
    %79 = arith.mulf %78, %77 : vector<8x512xf32>
    %80 = arith.addf %70, %79 : vector<8x512xf32>
    %c0_37 = arith.constant 0 : index
    %c0_38 = arith.constant 0 : index
    %81 = vector.load %arg11[%c0_37, %c0_38] : memref<1x512xf32, #tpu.memory_space<vmem>>, vector<1x512xf32>
    %c0_39 = arith.constant 0 : index
    %c0_40 = arith.constant 0 : index
    %82 = vector.load %arg12[%c0_39, %c0_40] : memref<5x512xf32, #tpu.memory_space<vmem>>, vector<5x512xf32>
    %83 = arith.mulf %2, %82 : vector<5x512xf32>
    %cst_41 = arith.constant dense<0.000000e+00> : vector<512xf32>
    %84 = vector.multi_reduction <add>, %83, %cst_41 [0] : vector<5x512xf32> to vector<512xf32>
    %85 = vector.shape_cast %84 : vector<512xf32> to vector<1x512xf32>
    %86 = arith.addf %81, %85 : vector<1x512xf32>
    %87 = vector.broadcast %86 : vector<1x512xf32> to vector<8x512xf32>
    %88 = arith.addf %80, %87 : vector<8x512xf32>
    %c0_42 = arith.constant 0 : index
    %c0_43 = arith.constant 0 : index
    %89 = vector.load %arg14[%c0_42, %c0_43] : memref<8x512xf32, #tpu.memory_space<vmem>>, vector<8x512xf32>
    tpu.vector_store %arg14[%c0_42, %c0_43], %88 {strides = array<i32>} : memref<8x512xf32, #tpu.memory_space<vmem>>, vector<8x512xf32>,
    return
  }
  func.func @transform_0(%arg0: i32) -> (i32, i32) {
    %c0_i32 = arith.constant 0 : i32
    %c0_i32_0 = arith.constant 0 : i32
    %c0_i32_1 = arith.constant 0 : i32
    return %c0_i32, %c0_i32_0 : i32, i32
  }
  func.func @transform_1(%arg0: i32) -> (i32, i32) {
    %c0_i32 = arith.constant 0 : i32
    %c0_i32_0 = arith.constant 0 : i32
    %c0_i32_1 = arith.constant 0 : i32
    return %c0_i32, %c0_i32_0 : i32, i32
  }
  func.func @transform_2(%arg0: i32) -> (i32, i32) {
    %c0_i32 = arith.constant 0 : i32
    %c0_i32_0 = arith.constant 0 : i32
    %c0_i32_1 = arith.constant 0 : i32
    return %c0_i32, %c0_i32_0 : i32, i32
  }
  func.func @transform_3(%arg0: i32) -> (i32, i32) {
    %c0_i32 = arith.constant 0 : i32
    %c0_i32_0 = arith.constant 0 : i32
    %c0_i32_1 = arith.constant 0 : i32
    return %c0_i32, %c0_i32_0 : i32, i32
  }
  func.func @transform_4(%arg0: i32) -> (i32, i32) {
    %c0_i32 = arith.constant 0 : i32
    %c0_i32_0 = arith.constant 0 : i32
    %c0_i32_1 = arith.constant 0 : i32
    return %c0_i32, %c0_i32_0 : i32, i32
  }
  func.func @transform_5(%arg0: i32) -> (i32, i32) {
    %c0_i32 = arith.constant 0 : i32
    %c0_i32_0 = arith.constant 0 : i32
    %c0_i32_1 = arith.constant 0 : i32
    return %c0_i32, %c0_i32_0 : i32, i32
  }
  func.func @transform_6(%arg0: i32) -> (i32, i32, i32) {
    %c0_i32 = arith.constant 0 : i32
    %c0_i32_0 = arith.constant 0 : i32
    %c0_i32_1 = arith.constant 0 : i32
    %c0_i32_2 = arith.constant 0 : i32
    return %c0_i32, %c0_i32_0, %c0_i32_1 : i32, i32, i32
  }
  func.func @transform_7(%arg0: i32) -> (i32, i32) {
    %c0_i32 = arith.constant 0 : i32
    %c0_i32_0 = arith.constant 0 : i32
    %c0_i32_1 = arith.constant 0 : i32
    return %c0_i32, %c0_i32_0 : i32, i32
  }
  func.func @transform_8(%arg0: i32) -> (i32, i32) {
    %c0_i32 = arith.constant 0 : i32
    %c0_i32_0 = arith.constant 0 : i32
    %c0_i32_1 = arith.constant 0 : i32
    return %c0_i32, %c0_i32_0 : i32, i32
  }
  func.func @transform_9(%arg0: i32) -> (i32, i32) {
    %c0_i32 = arith.constant 0 : i32
    %c0_i32_0 = arith.constant 0 : i32
    return %c0_i32, %arg0 : i32, i32
  }
  func.func @transform_10(%arg0: i32) -> (i32, i32) {
    %c0_i32 = arith.constant 0 : i32
    %c0_i32_0 = arith.constant 0 : i32
    return %c0_i32, %arg0 : i32, i32
  }
  func.func @transform_11(%arg0: i32) -> (i32, i32) {
    %c0_i32 = arith.constant 0 : i32
    %c0_i32_0 = arith.constant 0 : i32
    return %c0_i32, %arg0 : i32, i32
  }
  func.func @transform_12(%arg0: i32) -> (i32, i32, i32) {
    %c0_i32 = arith.constant 0 : i32
    %c0_i32_0 = arith.constant 0 : i32
    %c0_i32_1 = arith.constant 0 : i32
    return %c0_i32, %c0_i32_0, %arg0 : i32, i32, i32
  }
  func.func @transform_13(%arg0: i32) -> (i32, i32) {
    %c0_i32 = arith.constant 0 : i32
    %c0_i32_0 = arith.constant 0 : i32
    return %c0_i32, %arg0 : i32, i32
  }
}

</mosaic_0001>

<bundles_post_ra>
// kernel: tpu_custom_call.1
= control target key start
LH: loop header
LB: loop body
LE: loop exit
PB: predicated region body
PF: predicated region fallthrough
CT: control target
= control target key end

     0   :  { %s3071_s0 = inlined_call_operand.vmem [shape: f32[8,4], index: 0, kind: input, shape index: {}]   ;;  %s3072_s1 = inlined_call_operand.vmem [shape: f32[8,2], index: 1, kind: input, shape index: {}]   ;;  %s3073_s2 = inlined_call_operand.vmem [shape: f32[4,32], index: 2, kind: input, shape index: {}]   ;;  %s3074_s3 = inlined_call_operand.hbm [shape: f32[1,32], index: 3, kind: input, shape index: {}]   ;;  %s3075_s4 = inlined_call_operand.vmem [shape: f32[2,32], index: 4, kind: input, shape index: {}]   ;;  %s3076_s5 = inlined_call_operand.vmem [shape: f32[2,32], index: 5, kind: input, shape index: {}]   ;;  %s3077_s6 = inlined_call_operand.vmem [shape: f32[2,4,32], index: 6, kind: input, shape index: {}]   ;;  %s3078_s7 = inlined_call_operand.vmem [shape: f32[2,32], index: 7, kind: input, shape index: {}]   ;;  %s3079_s8 = inlined_call_operand.vmem [shape: f32[2,32], index: 8, kind: input, shape index: {}]   ;;  %s3080_s9 = inlined_call_operand.hbm [shape: f32[5,1024], index: 9, kind: input, shape index: {}]   ;;  %s3081_s10 = inlined_call_operand.vmem [shape: f32[1,1024], index: 10, kind: input, shape index: {}]   ;;  %s3082_s11 = inlined_call_operand.hbm [shape: f32[5,1024], index: 11, kind: input, shape index: {}]   ;;  %s3083_s12 = inlined_call_operand.hbm [shape: bf16[5,32,1024], index: 12, kind: input, shape index: {}]   ;;  %s3084_s13 = inlined_call_operand.hbm [shape: f32[8,1024], index: 13, kind: output, shape index: {}]  }
   0x1   :  { %3095 = sst [smem:[#allocation21_spill]] %s3074_s3 }
   0x2   :  { %3096 = sst [smem:[#allocation22_spill]] %s3076_s5 }
   0x3   :  { %3097 = sst [smem:[#allocation23_spill]] %s3078_s7 }
   0x4   :  { %3098 = sst [smem:[#allocation24_spill]] %s3079_s8 }
   0x5   :  { %3099 = sst [smem:[#allocation25_spill]] %s3080_s9 }
   0x6   :  { %3100 = sst [smem:[#allocation26_spill]] %s3081_s10 }
   0x7   :  { %3101 = sst [smem:[#allocation27_spill]] %s3084_s13 }
   0x8   :  { %18 = vsyncpa [#allocation3], 0 }
   0x9   :  { %19 = vsyncpa [#allocation6], 0 }
   0xa   :  { %21 = vsyncpa [#allocation6 + $0x1], 0 }
   0xb   :  { %22 = vsyncpa [#allocation9], 0 }
   0xc   :  { %24 = vsyncpa [#allocation9 + $0x1], 0 }
   0xd   :  { %25 = vsyncpa [#allocation4], 0 }
   0xe   :  { %27 = vsyncpa [#allocation4 + $0x1], 0  ;;  %s2485_s25 = smov 0   ;;  %s2487_s26 = smov 0  }
   0xf   :  { %s2489_s27 = smov 0   ;;  %s2491_s28 = smov 0  }
  0x10 LB: > { %3102 = sst [smem:[#allocation15_spill]] %s2393_s25  ;;  %s2506_s29 = sadd.s32 1, %s2405_s28   ;;  %s2405_s28 = sphi %s2491_s28, %s3127_s28   ;;  %s2401_s27 = sphi %s2489_s27, %s3129_s27   ;;  %s2397_s26 = sphi %s2487_s26, %s3131_s26   ;;  %s2393_s25 = sphi %s2485_s25, %s3130_s25  }
  0x11   : > { %3103 = sst [smem:[#allocation16_spill]] %s2401_s27  ;;  %s229_s30 = sadd.s32 1, %s2401_s27 }
  0x12   : > { %3104 = sst [smem:[#allocation17_spill]] %s2506_s29  ;;  %s226_s14 = ssub.s32 %s2405_s28, %s2506_s29 }
  0x13   : > { %p236_p0 = scmp.ne.s32.totalorder %s2401_s27, %s2397_s26  ;;  %p227_p1 = scmp.eq.s32.totalorder %s226_s14, 0 }
  0x14   : > { %p237_p2 = scmp.eq.s32.totalorder %s2405_s28, 0  ;;  %p2130_p4 = scmp.lt.s32.totalorder %s2405_s28, 2 }
  0x15   : > { %s2517_s15 = scalar_select %p227_p1, %s2401_s27, %s229_s30  }
  0x16   : > { %p238_p5 = por %p237_p2, %p236_p0  ;;  %s406_s16 = sand.u32 1, %s2405_s28  }
  0x17   : > { %3105 = sst [smem:[#allocation18_spill]] %s2517_s15  ;;  %s2524_s17 = sand.u32 1, %s2401_s27  }
  0x18   : > { %s3088_s18 = sshll.u32 %s2524_s17, 5  ;;  %s2053_s19 = sshll.u32 %s2405_s28, 5 }
  0x19   : > { %s3106_s9 = sld [smem:[#allocation25_spill]]  ;;  %s410_s24 = scalar_lea.vmem [#allocation5], %s3088_s18 }
  0x1a   : > { %s419_s14 = sshll.u32 %s410_s24, 4  ;;  %p2535_p6 = pnand %p2130_p4, %p238_p5  ;;  %s420_s14 = int_to_ptr.vmem [resolvable:$true] %s419_s14 }
  0x1b   : > { %s2542_s13 = scalar_lea.hbm %s3082_s11, %s2053_s19  ;;  %s2097_s20 = smul.u32 320, %s2524_s17 }
  0x1c   : > { %s2545_s21 = scalar_lea.sflag [#allocation6], %s406_s16  ;;  %p2215_p8 = pneg %p2535_p6 }
  0x1f   : > { %s415_s22 = scalar_lea.hbm %s3106_s9, %s2053_s19  ;;  %s2218_s29 = scalar_lea.hbm %s3106_s9, 64 }
  0x20   : > { %s417_s23 = sshll.u32 %s415_s22, 4  ;;  %s418_s23 = int_to_ptr.hbm [resolvable:$true] %s417_s23 }
  0x21   : > { %s2211_s22 = sshra.s32 %s418_s23, 4  ;;  %s2212_s22 = int_to_ptr.hbm [resolvable:$true] %s2211_s22 }
  0x22   : > { %s2213_s24 = scalar_lea.hbm %s2212_s22, 32  ;;  %p2219_p11 = scmp.lt.s32.totalorder %s2212_s22, %s3106_s9 }
  0x23   : > { %p2214_p7 = scmp.ne.s32.totalorder %s2212_s22, %s2213_s24  ;;  %p2220_p12 = scmp.lt.s32.totalorder %s2218_s29, %s2213_s24 }
  0x25   : > { %p2216_p9 = pnand %p2215_p8, %p2214_p7  ;;  %p2221_p13 = por %p2220_p12, %p2219_p11 }
  0x27   : > { %p2217_p10 = pneg %p2216_p9 }
  0x29   : > { %p2222_p1 = pnand %p2221_p13, %p2217_p10 }
  0x2b   : > { %2225 = shalt.err (!%p2222_p1)
}
  0x2c   : > { %2118 = dma.hbm_to_vmem [thread:$0]  (!%p2535_p6), %s418_s23, 512, %s420_s14, %s2545_s21  }
  0x2d   : > { %s458_s10 = scalar_lea.vmem [#allocation8], %s2097_s20  ;;  %s2564_s18 = sadd.s32 4294967295, %s2405_s28  }
  0x2e   : > { %s466_s16 = sshll.u32 %s458_s10, 4  ;;  %s1812_s22 = sadd.s32 4294967294, %s2405_s28   ;;  %s2561_s16 = int_to_ptr.vmem [resolvable:$true] %s466_s16 }
  0x2f   : > { %p242_p2 = scmp.ne.s32.totalorder %s2397_s26, %s2393_s25  ;;  %p3094_p4 = scmp.eq.s32.totalorder %s2564_s18, 0 }
  0x30   : > { %p344_p5 = scmp.eq.s32.totalorder %s2564_s18, 1  ;;  %p350_p7 = scmp.eq.s32.totalorder %s1812_s22, 1 }
  0x31   : > { %p1813_p9 = scmp.ge.s32.totalorder %s2405_s28, 1  ;;  %p2574_p10 = por %p3094_p4, %p242_p2 }
  0x32   : > { %p2581_p11 = por %p344_p5, %p236_p0  ;;  %p2585_p12 = por %p350_p7, %p242_p2 }
  0x33   : > { %p357_p13 = scmp.lt.s32.totalorder %s2405_s28, 3  ;;  %s3113_s3 = sld [smem:[#allocation21_spill]] }
  0x34   : > { %s3109_s14 = scalar_select %p2581_p11, 1, 0 }
  0x35   : > { %s3111_s20 = scalar_select %p2585_p12, 1, 0 }
  0x36   : > { %3110 = sst [smem:[#allocation19_spill]] %s3109_s14  ;;  %p2593_p1 = pnand %p1813_p9, %p357_p13 }
  0x37   : > { %3112 = sst [smem:[#allocation20_spill]] %s3111_s20  ;;  %s445_s10 = sshll.u32 %s2542_s13, 4  ;;  %s446_s10 = int_to_ptr.hbm [resolvable:$true] %s445_s10 }
  0x38   : > { %p2111_p0 = pneg %p2593_p1  ;;  %s2407_s22 = smov [#allocation2]  }
  0x39   : > { %s378_s15 = sshll.u32 %s3113_s3, 4  ;;  %s380_s9 = sshll.u32 %s2407_s22, 4  ;;  %s379_s15 = int_to_ptr.hbm [resolvable:$true] %s378_s15  ;;  %s381_s9 = int_to_ptr.vmem [resolvable:$true] %s380_s9 }
  0x3a   : > { %p2112_p2 = pnand %p2111_p0, %p3094_p4  ;;  %s3115_s27 = sshll.u32 %s2524_s17, 5 }
  0x3b   : > { %s438_s20 = scalar_lea.vmem [#allocation7], %s3115_s27  ;;  %s2055_s29 = sshll.u32 %s2405_s28, 4 }
  0x3c   : > { %s447_s24 = sshll.u32 %s438_s20, 4  ;;  %s463_s14 = scalar_lea.hbm %s3083_s12, %s2055_s29  ;;  %s448_s24 = int_to_ptr.vmem [resolvable:$true] %s447_s24 }
  0x3d   : > { %2114 = dma.hbm_to_vmem [thread:$0]  (!%p2112_p2), %s379_s15, 16, %s381_s9, [#allocation3]  }
  0x3e   : > { %s2271_s13 = sshra.s32 %s446_s10, 4  ;;  %s2278_s27 = scalar_lea.hbm %s3082_s11, 64  ;;  %s2272_s13 = int_to_ptr.hbm [resolvable:$true] %s2271_s13 }
  0x3f   : > { %s2273_s8 = scalar_lea.hbm %s2272_s13, 32  ;;  %p2279_p13 = scmp.lt.s32.totalorder %s2272_s13, %s3082_s11 }
  0x40   : > { %p2274_p5 = scmp.ne.s32.totalorder %s2272_s13, %s2273_s8  ;;  %p2280_p0 = scmp.lt.s32.totalorder %s2278_s27, %s2273_s8 }
  0x42   : > { %p2276_p7 = pnand %p2274_p5, %p2215_p8  ;;  %p2281_p3 = por %p2280_p0, %p2279_p13 }
  0x44   : > { %p2277_p9 = pneg %p2276_p7 }
  0x46   : > { %p2282_p4 = pnand %p2281_p3, %p2277_p9 }
  0x48   : > { %2285 = shalt.err (!%p2282_p4)
}
  0x49   : > { %2121 = dma.hbm_to_vmem [thread:$0]  (!%p2535_p6), %s446_s10, 512, %s448_s24, %s2545_s21  }
  0x4a   : > { %s464_s3 = sshll.u32 %s463_s14, 4  ;;  %s455_s9 = scalar_lea.sflag [#allocation9], %s2524_s17  ;;  %s465_s3 = int_to_ptr.hbm [resolvable:$true] %s464_s3 }
  0x4b   : > { %s2301_s25 = sshra.s32 %s465_s3, 4  ;;  %s2308_s15 = scalar_lea.hbm %s3083_s12, 640  ;;  %s2302_s25 = int_to_ptr.hbm [resolvable:$true] %s2301_s25 }
  0x4c   : > { %s2303_s7 = scalar_lea.hbm %s2302_s25, 320  ;;  %p2309_p3 = scmp.lt.s32.totalorder %s2302_s25, %s3083_s12 }
  0x4d   : > { %p2304_p2 = scmp.ne.s32.totalorder %s2302_s25, %s2303_s7  ;;  %p2310_p4 = scmp.lt.s32.totalorder %s2308_s15, %s2303_s7 }
  0x4f   : > { %p2306_p5 = pnand %p2304_p2, %p2215_p8  ;;  %p2311_p9 = por %p2310_p4, %p2309_p3 }
  0x51   : > { %p2307_p7 = pneg %p2306_p5 }
  0x53   : > { %p2312_p13 = pnand %p2311_p9, %p2307_p7 }
  0x55   : > { %2315 = shalt.err (!%p2312_p13)
}
  0x56   : > { %s2408_s17 = smov 512   ;;  %s2409_s21 = smov 256  }
  0x57   : > { %s2410_s14 = smov 16   ;;  %478 = sbr.rel (%p2593_p1) target bundleno = 681 (0x2a9), region = 72 }
  0x58   : > { %2124 = dma.hbm_to_vmem [thread:$0]  (!%p2535_p6), %s465_s3, 5120, %s2561_s16, %s455_s9, %s2408_s17, %s2409_s21, %s2410_s14  }
  0x59   : > { %p3116_p8 = scmp.eq.s32.totalorder (!%p2593_p1), %s2564_s18, 0 }
  0x5c   : > { %2376 = dma.done.wait (%p3116_p8), [#allocation3], 16   ;;  %p3117_p0 = pmov %p3116_p8 }
  0x5d   : > { %s485_s10 = sand.u32 1, %s2564_s18   ;;  %s2641_s24 = sand.u32 1, %s2397_s26  }
  0x5e   : > { %2378 = vsyncadd (%p3117_p0), [#allocation3], 4294967280  ;;  %s2644_s22 = sshll.u32 %s2641_s24, 5  ;;  %s486_s30 = scalar_lea.sflag [#allocation6], %s485_s10 }
  0x5f   : > { %s2647_s16 = scalar_lea.vmem [#allocation5], %s2644_s22 }
  0x60   : > { %2380 = dma.done.wait (%p2574_p10), %s486_s30, 1024  }
  0x61   : > { %2382 = vsyncadd (%p2574_p10), %s486_s30, 4294966272  ;;  %s2098_s19 = smul.u32 320, %s2641_s24  ;;  %s2655_s27 = scalar_lea.vmem [#allocation7], %s2644_s22 }
  0x62   : > { %s506_s20 = scalar_lea.sflag [#allocation9], %s2641_s24 }
  0x63   : > { %s2658_s3 = scalar_lea.vmem [#allocation8], %s2098_s19 }
  0x64   : > { %2384 = dma.done.wait (%p2574_p10), %s506_s20, 5120  }
  0x65   : > { %2386 = vsyncadd (%p2574_p10), %s506_s20, 4294962176  ;;  %v618_v0 = vlaneseq  ;;  %v2411_v2 = vmov 1934713408   ;;  %vm719_vm0 = vcmask 1047556   ;;  %vm592_vm1 = vcmask 1043456   ;;  %v578_v4 = vld [vmem:[%s3072_s1] sm:$0xff] }
  0x66   : > { %v724_v3 = vunpack.c.l.s4 %v2411_v2  ;;  %vm588_vm2 = vcmask 31744   ;;  %v1832_v5 = vld.sshfl [vmem:[%s3077_s6] sm:$0x33 pattern:$0x76325410]  ;;  %v624_v8 = vperm.slane %v578_v4, 1 }
  0x67   : > { %v619_v1 = vshrl.u32 %v618_v0, 7  ;;  %v2675_v7 = vld [vmem:[%s3071_s0] sm:$0xff]  ;;  %v721_v9 = vrot.slane %v1832_v5, 4  ;;  %v666_v12 = vperm.slane %v578_v4, 7  ;;  %v2412_v16 = vmov 1983009808  }
  0x68   : > { %v2670_v6 = vunpack.c.0.s8 %v724_v3  ;;  %v583_v10 = vld [vmem:[%s3073_s2] sm:$0xf]  ;;  %v1833_v11 = vld.sshfl [vmem:[%s3077_s6 + $0x4] sm:$0x33 pattern:$0x76325410]  ;;  %v737_v17 = vunpack.c.l.s4 %v2412_v16 }
  0x69   : > { %2174 = vset.pattern.permute.xlu1 %v619_v1  ;;  %2175 = vset.pattern.permute.xlu2 %v619_v1  ;;  %v718_v13 = vrot.slane %v1833_v11, 4  ;;  %v722_v14 = vsel %vm719_vm0, %v1833_v11, %v721_v9  ;;  %v631_v24 = vperm.slane %v578_v4, 2  ;;  %v617_v27 = vperm.slane %v578_v4, 0  ;;  %s2413_s21 = smov 32   ;;  %v2710_v42 = vld [vmem:[%s3075_s4] sm:$0x3] }
  0x6a   : > { %2173 = vset.pattern.permute.xlu0 %v619_v1  ;;  %1830 = vmatpush.msk.msra.mxu0 %vm592_vm1, %v583_v10  ;;  %v730_v15 = vperm.slane %v722_v14, %v2670_v6  ;;  %v2691_v23 = vunpack.c.0.s8 %v737_v17  ;;  %v652_v34 = vperm.slane %v578_v4, 5  ;;  %v659_v36 = vperm.slane %v578_v4, 6  ;;  %s3118_s20 = sld [smem:[#allocation22_spill]]  ;;  %v1854_v47 = vld [vmem:[%s2658_s3 + $0x20] sm:$0xf]  ;;  %s2414_s5 = smov 96  }
  0x6b   : > { %1831 = vmatmul.msk.f32.vlgmr.msra.gmra.mxu0 %vm588_vm2, %v2675_v7  ;;  %v720_v18 = vsel %vm719_vm0, %v718_v13, %v1832_v5  ;;  %v638_v39 = vperm.slane %v578_v4, 3  ;;  %v645_v40 = vperm.slane %v578_v4, 4  ;;  %v2062_v48 = vld [vmem:[%s2658_s3 + $0x2c] sm:$0xf0]  ;;  %v2060_v49 = vld [vmem:[%s2658_s3 + $0x24] sm:$0xf] }
  0x6c   : > { %v726_v19 = vperm.slane %v720_v18, %v2670_v6  ;;  %v733_v20 = vrot.slane %v730_v15, 4  ;;  %v1855_v51 = vor.u32 %v2062_v48, %v1854_v47  ;;  %v1856_v52 = vld [vmem:[%s2658_s3 + $0x30] sm:$0xf0]  ;;  %v1862_v53 = vld [vmem:[%s2658_s3 + $0x28] sm:$0xf]  ;;  %vm1047_vm3 = vcmask 1041409  }
  0x6d   : > { %v1859_v56 = vor.u32 %v2060_v49, %v1856_v52  ;;  %v2063_v57 = vld [vmem:[%s2658_s3 + $0x34] sm:$0xf0]  ;;  %v1838_v60 = vld [vmem:[%s2658_s3] sm:$0xf]  ;;  %v2058_v61 = vld [vmem:[%s2658_s3 + $0xc] sm:$0xf0] }
  0x6e   : > { %v731_v21 = vrot.slane %v726_v19, 4  ;;  %v734_v22 = vsel %vm719_vm0, 0.0, %v733_v20  ;;  %v735_v25 = vsel %vm719_vm0, %v733_v20, %v726_v19  ;;  %959 = vmatpush.bf16.msra.mxu2 %v1855_v51  ;;  %v1863_v58 = vor.u32 %v2063_v57, %v1862_v53  ;;  %v2056_v62 = vld [vmem:[%s2658_s3 + $0x4] sm:$0xf]  ;;  %v1840_v1 = vld [vmem:[%s2658_s3 + $0x10] sm:$0xf0] }
  0x6f   : > { %v740_v26 = vrot.slane %v734_v22, 4  ;;  %v739_v30 = vperm.slane %v735_v25, %v2691_v23  ;;  %972 = vmatpush.bf16.msra.mxu3 %v1859_v56  ;;  %v1839_v0 = vor.u32 %v2058_v61, %v1838_v60  ;;  %v1846_v2 = vld [vmem:[%s2658_s3 + $0x8] sm:$0xf]  ;;  %v2059_v3 = vld [vmem:[%s2658_s3 + $0x14] sm:$0xf0]  ;;  %v1843_v4 = vor.u32 %v2056_v62, %v1840_v1  ;;  %s3119_s7 = sld [smem:[#allocation23_spill]] }
  0x70   : > { %v732_v28 = vsel %vm719_vm0, 0.0, %v731_v21  ;;  %v2719_v45 = vld [vmem:[%s3118_s20] sm:$0x3]  ;;  %985 = vmatpush.bf16.msrb.mxu0 %v1863_v58  ;;  %v1847_v5 = vor.u32 %v2059_v3, %v1846_v2  ;;  %vm758_vm4 = vcmask 261120   ;;  %v2061_v19 = vld [vmem:[%s2658_s3 + $0x2c] sm:$0xf] }
  0x71   : > { %629 = vperm.xlu1 %2174, %v624_v8   ;;  %671 = vperm.xlu2 %2175, %v666_v12   ;;  %v741_v29 = vsel %vm719_vm0, %v740_v26, %v732_v28  ;;  %v2176_v8 = vld [vmem:[#allocation2] ss:$0 sm:$0xff]  ;;  %v1898_v21 = vld [vmem:[%s2658_s3 + $0x60] sm:$0xf]  ;;  %v2070_v22 = vld [vmem:[%s2658_s3 + $0x6c] sm:$0xf0] }
  0x72   : > { %v745_v31 = vperm.slane %v741_v29, %v2691_v23  ;;  %960 = vmatpush.bf16.msra.mxu2 %v1839_v0  ;;  %v1864_v20 = vld [vmem:[%s2658_s3 + $0x38] sm:$0xf0]  ;;  %v1900_v28 = vld [vmem:[%s2658_s3 + $0x70] sm:$0xf0]  ;;  %v1906_v29 = vld [vmem:[%s2658_s3 + $0x68] sm:$0xf] }
  0x73   : > { %973 = vmatpush.bf16.msra.mxu3 %v1843_v4  ;;  %v1882_v49 = vld [vmem:[%s2658_s3 + $0x40] sm:$0xf]  ;;  %v2066_v51 = vld [vmem:[%s2658_s3 + $0x4c] sm:$0xf0]  ;;  %v2064_v52 = vld [vmem:[%s2658_s3 + $0x44] sm:$0xf] }
  0x74   : > { %v746_v32 = vrot.slane %v745_v31, 4  ;;  %986 = vmatpush.bf16.msrb.mxu0 %v1847_v5  ;;  %v1867_v31 = vor.u32 %v2061_v19, %v1864_v20  ;;  %v1884_v56 = vld [vmem:[%s2658_s3 + $0x50] sm:$0xf0]  ;;  %v1890_v57 = vld [vmem:[%s2658_s3 + $0x48] sm:$0xf]  ;;  %vm1050_vm5 = vcmask 1042434  }
  0x75   : > { %v2754_v25 = vld [vmem:[%s3119_s7] sm:$0x3]  ;;  %v2067_v58 = vld [vmem:[%s2658_s3 + $0x54] sm:$0xf0]  ;;  %v1887_v60 = vor.u32 %v2064_v52, %v1884_v56  ;;  %v2065_v1 = vld [vmem:[%s2658_s3 + $0x4c] sm:$0xf] }
  0x76   : > { %v747_v33 = vsel %vm719_vm0, %v746_v32, %v739_v30  ;;  %v2057_v32 = vld [vmem:[%s2658_s3 + $0xc] sm:$0xf]  ;;  %v1891_v61 = vor.u32 %v2067_v58, %v1890_v57  ;;  %v1892_v2 = vld [vmem:[%s2658_s3 + $0x58] sm:$0xf0]  ;;  %vm1053_vm6 = vcmask 1043459   ;;  %vm1056_vm7 = vcmask 1044484  }
  0x77   : > { %v2700_v35 = vperm.slane %v747_v33, %v2670_v6  ;;  %v1848_v33 = vld [vmem:[%s2658_s3 + $0x18] sm:$0xf0]  ;;  %vm1059_vm8 = vcmask 1045509   ;;  %vm1062_vm9 = vcmask 1046534   ;;  %vm1065_vm10 = vcmask 1047559   ;;  %s3120_s8 = sld [smem:[#allocation24_spill]] }
  0x78   : > { %vm1601_vm11 = vcmask 1044480   ;;  %vm1637_vm12 = vcmask 1040384   ;;  %s3121_s29 = sld [smem:[#allocation26_spill]]  ;;  %vm1640_vm13 = vcmask 1041408   ;;  %s2096_s17 = sshll.u32 %s2564_s18, 5 }
  0x79   : > { %636 = vperm.xlu1 %2174, %v631_v24   ;;  %622 = vperm.xlu2 %2175, %v617_v27   ;;  %v752_v37 = vrot.slane %v2700_v35, 4  ;;  %v2068_v24 = vld [vmem:[%s2658_s3 + $0x64] sm:$0xf]  ;;  %v1899_v27 = vor.u32 %v2070_v22, %v1898_v21  ;;  %s3122_s10 = sld [smem:[#allocation27_spill]]  ;;  %s1662_s25 = scalar_lea.sflag [#allocation4], %s2641_s24 }
  0x7b   : > { %v753_v38 = vsel %vm719_vm0, 0.0, %v752_v37  ;;  %1117 = vmatpush.bf16.msrb.mxu2 %v1899_v27 }
  0x7c   : > { %755 = vrot.lane.b32.xlu0 %v753_v38, %s2413_s21 }
  0x7f   : > { %s1673_s30 = scalar_lea.hbm %s3122_s10, %s2096_s17  ;;  %s2351_s23 = scalar_lea.hbm %s3122_s10, 64 }
  0x80   : > { %s1677_s9 = sshll.u32 %s1673_s30, 4  ;;  %s1678_s9 = int_to_ptr.hbm [resolvable:$true] %s1677_s9 }
  0x81   : > { %657 = vperm.xlu1 %2174, %v652_v34   ;;  %664 = vperm.xlu2 %2175, %v659_v36   ;;  %v1903_v34 = vor.u32 %v2068_v24, %v1900_v28  ;;  %v2071_v36 = vld [vmem:[%s2658_s3 + $0x74] sm:$0xf0] }
  0x83   : > { %1130 = vmatpush.bf16.msrb.mxu3 %v1903_v34 }
  0x84   : > { %643 = vperm.xlu0 %2173, %v638_v39   ;;  %v1907_v39 = vor.u32 %v2071_v36, %v1906_v29 }
  0x86   : > { %1143 = vmatpush.bf16.msra.mxu0 %v1907_v39 }
  0x87   : > { %1131 = vmatpush.bf16.msrb.mxu3 %v1887_v60 }
  0x8a   : > { %1144 = vmatpush.bf16.msra.mxu0 %v1891_v61 }
  0x8c   : > { %650 = vperm.xlu0 %2173, %v645_v40   ;;  %v2069_v40 = vld [vmem:[%s2658_s3 + $0x6c] sm:$0xf] }
  0xcb   : > { %v2705_v41 = vpop.permute.xlu2 %671 }
  0xcc   : > { %v707_v47 = vmul.f32 %v2754_v25, %v2705_v41 }
  0xce   : > { %v778_v3 = vrot.slane %v707_v47, 4 }
  0xd3   : > { %v2712_v43 = vpop.permute.xlu2 %622 }
  0xd4   : > { %v674_v44 = vmul.f32 %v2710_v42, %v2712_v43  ;;  %v700_v5 = vmul.f32 %v2754_v25, %v2712_v43 }
  0xd6   : > { %v683_v46 = vadd.f32 %v2719_v45, %v674_v44  ;;  %v1908_v44 = vld [vmem:[%s2658_s3 + $0x78] sm:$0xf0] }
  0xd8   : > { %2177 = vtanh.f32 %v683_v46 }
  0xde   : > { %v2178_v54 = vpop.eup %2177 }
  0xdf   : > { %v1013_v63 = vpack.c.bf16 %v2178_v54, %v2178_v54  ;;  %v1851_v54 = vor.u32 %v2057_v32, %v1848_v33 }
  0xe1   : > { %v2739_v9 = vunpack.c.l.b16 %v1013_v63 }
  0xe3   : > { %v2725_v50 = vpop.permute.xlu1 %629  ;;  %v1339_v17 = vrot.slane %v2739_v9, 1 }
  0xe4   : > { %v675_v55 = vmul.f32 %v2710_v42, %v2725_v50  ;;  %v701_v19 = vmul.f32 %v2754_v25, %v2725_v50 }
  0xe6   : > { %v684_v59 = vadd.f32 %v2719_v45, %v675_v55  ;;  %v1883_v55 = vor.u32 %v2066_v51, %v1882_v49 }
  0xe8   : > { %2179 = vtanh.f32 %v684_v59  ;;  %v613_v12 = vpop.f32.mrf.mxu0  ;;  %1118 = vmatpush.bf16.msrb.mxu2 %v1883_v55 }
  0xe9   : > { %v614_v13 = vadd.f32 %v2176_v8, %v613_v12 }
  0xeb   : > { %v637_v10 = vpop.permute.xlu1 %636  ;;  %2181 = vtanh.f32 %v614_v13 }
  0xec   : > { %v676_v11 = vmul.f32 %v2710_v42, %v637_v10  ;;  %v702_v59 = vmul.f32 %v2754_v25, %v637_v10 }
  0xee   : > { %v2180_v14 = vpop.eup %2179  ;;  %v685_v15 = vadd.f32 %v2719_v45, %v676_v11  ;;  %v756_v30 = vpop.permute.xlu0 %755  ;;  %v760_v8 = vrot.slane %v702_v59, 4 }
  0xef   : > { %v1014_v16 = vpack.c.bf16 %v2180_v14, %v2180_v14  ;;  %v759_v38 = vsel %vm758_vm4, %v2700_v35, %v756_v30  ;;  %v665_v35 = vpop.permute.xlu2 %664 }
  0xf0   : > { %2183 = vtanh.f32 %v685_v15  ;;  %1834 = vmatpush.msk.msra.mxu1 %vm592_vm1, %v759_v38  ;;  %v680_v0 = vmul.f32 %v2710_v42, %v665_v35  ;;  %v706_v22 = vmul.f32 %v2754_v25, %v665_v35 }
  0xf1   : > { %v2744_v18 = vunpack.c.l.b16 %v1014_v16  ;;  %v2182_v37 = vpop.eup %2181  ;;  %1835 = vmatmul.msk.f32.vlgmr.msra.gmra.mxu1 %vm588_vm2, %v2675_v7  ;;  %v1911_v7 = vor.u32 %v2069_v40, %v1908_v44  ;;  %v1895_v16 = vor.u32 %v2065_v1, %v1892_v2 }
  0xf2   : > { %v901_v48 = vpack.c.bf16 %v2182_v37, %v2182_v37  ;;  %998 = vmatpush.bf16.msrb.mxu1 %v1867_v31  ;;  %v689_v43 = vadd.f32 %v2719_v45, %v680_v0  ;;  %v772_v33 = vrot.slane %v706_v22, 4 }
  0xf3   : > { %v1340_v26 = vsel %vm1047_vm3, %v2744_v18, %v1339_v17  ;;  %v658_v63 = vpop.permute.xlu1 %657  ;;  %v681_v17 = vmul.f32 %v2710_v42, %v2705_v41  ;;  %v1046_v55 = vrot.slane %v2744_v18, 7 }
  0xf4   : > { %1868 = vmatmul.msk.bf16.vlgmr.msra.gmra.mxu2 %vm758_vm4, %v901_v48  ;;  %1869 = vmatmul.msk.bf16.vlgmr.msra.gmra.mxu3 %vm758_vm4, %v901_v48  ;;  %v679_v10 = vmul.f32 %v2710_v42, %v658_v63  ;;  %v705_v11 = vmul.f32 %v2754_v25, %v658_v63 }
  0xf5   : > { %1870 = vmatmul.msk.bf16.vlgmr.msrb.gmra.mxu0 %vm758_vm4, %v901_v48  ;;  %v690_v28 = vadd.f32 %v2719_v45, %v681_v17  ;;  %v1048_v2 = vsel %vm1047_vm3, %v1046_v55, %v2739_v9 }
  0xf6   : > { %v2184_v46 = vpop.eup %2183  ;;  %v644_v12 = vpop.permute.xlu0 %643  ;;  %999 = vmatpush.bf16.msrb.mxu1 %v1851_v54  ;;  %v688_v24 = vadd.f32 %v2719_v45, %v679_v10  ;;  %v779_v27 = vsel %vm719_vm0, %v778_v3, %v705_v11 }
  0xf7   : > { %v1015_v53 = vpack.c.bf16 %v2184_v46, %v2184_v46  ;;  %v677_v14 = vmul.f32 %v2710_v42, %v644_v12  ;;  %v703_v15 = vmul.f32 %v2754_v25, %v644_v12  ;;  %v783_v30 = vperm.slane %v779_v27, %v2691_v23 }
  0xf9   : > { %v2780_v62 = vunpack.c.l.b16 %v1015_v53  ;;  %v686_v20 = vadd.f32 %v2719_v45, %v677_v14  ;;  %v766_v21 = vrot.slane %v703_v15, 4  ;;  %1871 = vmatmul.msk.bf16.vlgmr.msrb.gmra.mxu1 %vm758_vm4, %v901_v48  ;;  %v790_v47 = vrot.slane %v783_v30, 4 }
  0xfa   : > { %1156 = vmatpush.bf16.msra.mxu1 %v1911_v7 }
  0xfb   : > { %v1341_v4 = vrot.slane %v2780_v62, 7  ;;  %2185 = vtanh.f32 %v686_v20  ;;  %v767_v41 = vsel %vm719_vm0, %v766_v21, %v701_v19  ;;  %v1049_v0 = vrot.slane %v2780_v62, 6 }
  0xfc   : > { %2187 = vtanh.f32 %v689_v43  ;;  %v771_v50 = vperm.slane %v767_v41, %v2691_v23 }
  0xfd   : > { %v1342_v13 = vsel %vm1050_vm5, %v1341_v4, %v1340_v26  ;;  %v761_v26 = vsel %vm719_vm0, %v760_v8, %v700_v5  ;;  %2189 = vtanh.f32 %v688_v24  ;;  %v1051_v10 = vsel %vm1050_vm5, %v1049_v0, %v1048_v2 }
  0xfe   : > { %1157 = vmatpush.bf16.msra.mxu1 %v1895_v16  ;;  %v765_v29 = vperm.slane %v761_v26, %v2691_v23  ;;  %v784_v31 = vrot.slane %v771_v50, 4  ;;  %v651_v32 = vpop.permute.xlu0 %650  ;;  %2191 = vtanh.f32 %v690_v28 }
  0xff   : > { %v678_v34 = vmul.f32 %v2710_v42, %v651_v32  ;;  %v704_v36 = vmul.f32 %v2754_v25, %v651_v32 }
 0x100   : > { %v785_v37 = vsel %vm719_vm0, %v784_v31, %v765_v29 }
 0x101   : > { %v2186_v38 = vpop.eup %2185  ;;  %v687_v39 = vadd.f32 %v2719_v45, %v678_v34  ;;  %v773_v40 = vsel %vm719_vm0, %v772_v33, %v704_v36  ;;  %v789_v44 = vperm.slane %v785_v37, %v2670_v6 }
 0x102   : > { %v2188_v46 = vpop.eup %2187  ;;  %v1016_v48 = vpack.c.bf16 %v2186_v38, %v2186_v38  ;;  %v777_v49 = vperm.slane %v773_v40, %v2691_v23  ;;  %v2849_v40 = vld [vmem:[%s2647_s16 + $0x18] sm:$0x1f] }
 0x103   : > { %2193 = vtanh.f32 %v687_v39  ;;  %v2190_v51 = vpop.eup %2189  ;;  %v1019_v52 = vpack.c.bf16 %v2188_v46, %v2188_v46  ;;  %v798_v35 = vrot.slane %v789_v44, 4  ;;  %v2846_v39 = vld [vmem:[%s2647_s16 + $0x10] sm:$0x1f]  ;;  %v1008_v46 = vperm.slane %v2849_v40, 0 }
 0x104   : > { %v1041_v42 = vunpack.c.l.b16 %v1016_v48  ;;  %v791_v25 = vsel %vm719_vm0, %v790_v47, %v777_v49  ;;  %v2192_v45 = vpop.eup %2191  ;;  %v1018_v56 = vpack.c.bf16 %v2190_v51, %v2190_v51  ;;  %v2854_v47 = vld [vmem:[%s2647_s16] sm:$0x1f]  ;;  %v2857_v48 = vld [vmem:[%s2647_s16 + $0x8] sm:$0x1f]  ;;  %v1165_v49 = vperm.slane %v2846_v39, 1 }
 0x105   : > { %v795_v53 = vperm.slane %v791_v25, %v2670_v6  ;;  %v1020_v61 = vpack.c.bf16 %v2192_v45, %v2192_v45  ;;  %v1044_v63 = vunpack.c.l.b16 %v1019_v52  ;;  %v1166_v51 = vperm.slane %v2849_v40, 1 }
 0x106   : > { %v1343_v54 = vrot.slane %v1041_v42, 6  ;;  %v1043_v18 = vunpack.c.l.b16 %v1018_v56  ;;  %v1052_v3 = vrot.slane %v1041_v42, 5  ;;  %v1005_v52 = vperm.slane %v2854_v47, 0 }
 0x107   : > { %v799_v57 = vsel %vm719_vm0, %v795_v53, %v798_v35  ;;  %v796_v58 = vrot.slane %v795_v53, 4  ;;  %v1045_v5 = vunpack.c.l.b16 %v1020_v61  ;;  %v1061_v8 = vrot.slane %v1044_v63, 2 }
 0x108   : > { %v1344_v59 = vsel %vm1053_vm6, %v1343_v54, %v1342_v13  ;;  %801 = vrot.lane.b32.xlu1 %v799_v57, %s2413_s21  ;;  %v1058_v13 = vrot.slane %v1043_v18, 3  ;;  %v1347_v14 = vrot.slane %v1043_v18, 4  ;;  %v1054_v15 = vsel %vm1053_vm6, %v1052_v3, %v1051_v10 }
 0x109   : > { %v2194_v60 = vpop.eup %2193  ;;  %v797_v7 = vsel %vm719_vm0, %v796_v58, %v789_v44  ;;  %v1349_v62 = vrot.slane %v1044_v63, 3  ;;  %v1064_v17 = vrot.slane %v1045_v5, 1  ;;  %v1351_v43 = vrot.slane %v1045_v5, 2 }
 0x10a   : > { %v1017_v1 = vpack.c.bf16 %v2194_v60, %v2194_v60  ;;  %v1007_v44 = vperm.slane %v2846_v39, 0  ;;  %v1006_v53 = vperm.slane %v2857_v48, 0  ;;  %v1163_v56 = vperm.slane %v2854_v47, 1 }
 0x10b   : > { %v1164_v57 = vperm.slane %v2857_v48, 1 }
 0x10c   : > { %v1042_v4 = vunpack.c.l.b16 %v1017_v1 }
 0x10e   : > { %v1055_v11 = vrot.slane %v1042_v4, 4  ;;  %v1345_v12 = vrot.slane %v1042_v4, 5 }
 0x110   : > { %v1057_v16 = vsel %vm1056_vm7, %v1055_v11, %v1054_v15  ;;  %v1346_v9 = vsel %vm1056_vm7, %v1345_v12, %v1344_v59  ;;  %v2078_v15 = vld [vmem:[%s2658_s3 + $0xec] sm:$0xf0] }
 0x111   : > { %v1348_v19 = vsel %vm1059_vm8, %v1347_v14, %v1346_v9  ;;  %v1060_v20 = vsel %vm1059_vm8, %v1058_v13, %v1057_v16  ;;  %v1942_v14 = vld [vmem:[%s2658_s3 + $0xe0] sm:$0xf] }
 0x112   : > { %v1063_v21 = vsel %vm1062_vm9, %v1061_v8, %v1060_v20  ;;  %v1350_v22 = vsel %vm1062_vm9, %v1349_v62, %v1348_v19  ;;  %v2076_v62 = vld [vmem:[%s2658_s3 + $0xe4] sm:$0xf]  ;;  %v1943_v9 = vor.u32 %v2078_v15, %v1942_v14  ;;  %v2079_v19 = vld [vmem:[%s2658_s3 + $0xf4] sm:$0xf0]  ;;  %v2082_v14 = vld [vmem:[%s2658_s3 + $0x8c] sm:$0xf0] }
 0x113   : > { %v1066_v24 = vsel %vm1065_vm10, %v1064_v17, %v1063_v21  ;;  %v2838_v26 = vsel %vm1065_vm10, %v1351_v43, %v1350_v22  ;;  %v1944_v17 = vld [vmem:[%s2658_s3 + $0xf0] sm:$0xf0]  ;;  %v1950_v43 = vld [vmem:[%s2658_s3 + $0xe8] sm:$0xf]  ;;  %v2077_v22 = vld [vmem:[%s2658_s3 + $0xec] sm:$0xf] }
 0x114   : > { %v1067_v27 = vpack.c.b16 %v1066_v24, %v1066_v24  ;;  %v1947_v20 = vor.u32 %v2076_v62, %v1944_v17  ;;  %v1951_v21 = vor.u32 %v2079_v19, %v1950_v43  ;;  %v1952_v24 = vld [vmem:[%s2658_s3 + $0xf8] sm:$0xf0]  ;;  %1272 = vmatpush.bf16.msra.mxu2 %v1943_v9  ;;  %v2080_v43 = vld [vmem:[%s2658_s3 + $0x84] sm:$0xf]  ;;  %v1972_v19 = vld [vmem:[%s2658_s3 + $0x90] sm:$0xf0] }
 0x116   : > { %1912 = vmatmul.msk.bf16.vlgmr.msrb.gmra.mxu2 %vm758_vm4, %v1067_v27  ;;  %1913 = vmatmul.msk.bf16.vlgmr.msrb.gmra.mxu3 %vm758_vm4, %v1067_v27 }
 0x117   : > { %1914 = vmatmul.msk.bf16.vlgmr.msra.gmra.mxu0 %vm758_vm4, %v1067_v27  ;;  %1915 = vmatmul.msk.bf16.vlgmr.msra.gmra.mxu1 %vm758_vm4, %v1067_v27  ;;  %v1926_v27 = vld [vmem:[%s2658_s3 + $0xc0] sm:$0xf] }
 0x118   : > { %1285 = vmatpush.bf16.msra.mxu3 %v1947_v20  ;;  %1298 = vmatpush.bf16.msrb.mxu0 %v1951_v21 }
 0x16e   : > { %v825_v41 = vpop.f32.mrf.mxu1 }
 0x172   : > { %v988_v28 = vpop.f32.mrf.mxu0 }
 0x173   : > { %v1011_v42 = vmul.f32 %v1007_v44, %v988_v28  ;;  %v1955_v28 = vor.u32 %v2077_v22, %v1952_v24  ;;  %v1978_v24 = vld [vmem:[%s2658_s3 + $0x88] sm:$0xf] }
 0x175   : > { %1311 = vmatpush.bf16.msrb.mxu1 %v1955_v28 }
 0x176   : > { %v1001_v29 = vpop.f32.mrf.mxu1 }
 0x177   : > { %v962_v50 = vpop.f32.mrf.mxu2  ;;  %v975_v30 = vpop.f32.mrf.mxu3  ;;  %v1012_v25 = vmul.f32 %v1008_v46, %v1001_v29  ;;  %v2072_v29 = vld [vmem:[%s2658_s3 + $0xc4] sm:$0xf]  ;;  %v2073_v46 = vld [vmem:[%s2658_s3 + $0xcc] sm:$0xf] }
 0x178   : > { %v1009_v60 = vmul.f32 %v1005_v52, %v962_v50  ;;  %v1010_v61 = vmul.f32 %v1006_v53, %v975_v30  ;;  %v2074_v50 = vld [vmem:[%s2658_s3 + $0xcc] sm:$0xf0]  ;;  %v1928_v30 = vld [vmem:[%s2658_s3 + $0xd0] sm:$0xf0] }
 0x17a   : > { %v990_v31 = vpop.f32.mrf.mxu0  ;;  %v802_v32 = vpop.permute.xlu1 %801 }
 0x17b   : > { %v804_v33 = vsel %vm758_vm4, %v797_v7, %v802_v32 }
 0x17c   : > { %v826_v34 = vadd.f32 %v825_v41, %v804_v33  ;;  %v1927_v33 = vor.u32 %v2074_v50, %v1926_v27  ;;  %v2083_v27 = vld [vmem:[%s2658_s3 + $0x94] sm:$0xf0]  ;;  %v2081_v50 = vld [vmem:[%s2658_s3 + $0x8c] sm:$0xf] }
 0x17e   : > { %829 = vrot.lane.b32.xlu2 %v826_v34, %s2414_s5  ;;  %v1003_v37 = vpop.f32.mrf.mxu1  ;;  %v832_v10 = vrot.slane %v826_v34, 4  ;;  %v837_v11 = vperm.slane %v826_v34, %v2691_v23  ;;  %v1931_v34 = vor.u32 %v2072_v29, %v1928_v30  ;;  %1273 = vmatpush.bf16.msra.mxu2 %v1927_v33  ;;  %v1980_v29 = vld [vmem:[%s2658_s3 + $0x98] sm:$0xf0]  ;;  %v1975_v33 = vor.u32 %v2080_v43, %v1972_v19  ;;  %v2030_v43 = vld [vmem:[%s2658_s3 + $0x120] sm:$0xf] }
 0x17f   : > { %v964_v36 = vpop.f32.mrf.mxu2  ;;  %v977_v38 = vpop.f32.mrf.mxu3  ;;  %v2075_v37 = vld [vmem:[%s2658_s3 + $0xd4] sm:$0xf0] }
 0x180   : > { %v833_v12 = vsel %vm719_vm0, 0.0, %v832_v10  ;;  %v854_v13 = vrot.slane %v837_v11, 4  ;;  %v1934_v36 = vld [vmem:[%s2658_s3 + $0xc8] sm:$0xf]  ;;  %1286 = vmatpush.bf16.msra.mxu3 %v1931_v34  ;;  %v1979_v34 = vor.u32 %v2083_v27, %v1978_v24 }
 0x181   : > { %v841_v16 = vperm.slane %v833_v12, %v2691_v23  ;;  %v1935_v44 = vor.u32 %v2075_v37, %v1934_v36  ;;  %v1996_v12 = vld [vmem:[%s2658_s3 + $0xb8] sm:$0xf0] }
 0x183   : > { %v866_v38 = vrot.slane %v841_v16, 4  ;;  %1299 = vmatpush.bf16.msrb.mxu0 %v1935_v44 }
 0x194   : > { %v1146_v35 = vpop.f32.mrf.mxu0  ;;  %v1159_v45 = vpop.f32.mrf.mxu1 }
 0x195   : > { %v1169_v54 = vmul.f32 %v1165_v49, %v1146_v35  ;;  %v1170_v55 = vmul.f32 %v1166_v51, %v1159_v45  ;;  %v1936_v49 = vld [vmem:[%s2658_s3 + $0xd8] sm:$0xf0] }
 0x196   : > { %v2896_v51 = vld [vmem:[%s3120_s8] sm:$0x3]  ;;  %v1939_v53 = vor.u32 %v2073_v46, %v1936_v49 }
 0x197   : > { %v2865_v58 = vadd.f32 %v1169_v54, %v1011_v42  ;;  %v2867_v59 = vadd.f32 %v1170_v55, %v1012_v25  ;;  %v1986_v54 = vld [vmem:[%s2658_s3 + $0xa0] sm:$0xf]  ;;  %v2086_v55 = vld [vmem:[%s2658_s3 + $0xac] sm:$0xf0] }
 0x198   : > { %1312 = vmatpush.bf16.msrb.mxu1 %v1939_v53 }
 0x199   : > { %v1120_v63 = vpop.f32.mrf.mxu2  ;;  %v1133_v7 = vpop.f32.mrf.mxu3 }
 0x19a   : > { %v1167_v0 = vmul.f32 %v1163_v56, %v1120_v63  ;;  %v1168_v1 = vmul.f32 %v1164_v57, %v1133_v7  ;;  %v2084_v56 = vld [vmem:[%s2658_s3 + $0xa4] sm:$0xf]  ;;  %v1994_v63 = vld [vmem:[%s2658_s3 + $0xa8] sm:$0xf]  ;;  %v2087_v7 = vld [vmem:[%s2658_s3 + $0xb4] sm:$0xf0] }
 0x19c   : > { %v2869_v2 = vadd.f32 %v1167_v0, %v1009_v60  ;;  %v2871_v18 = vadd.f32 %v1168_v1, %v1010_v61  ;;  %v1148_v3 = vpop.f32.mrf.mxu0  ;;  %v1161_v4 = vpop.f32.mrf.mxu1  ;;  %v1987_v60 = vor.u32 %v2086_v55, %v1986_v54  ;;  %v1988_v61 = vld [vmem:[%s2658_s3 + $0xb0] sm:$0xf0] }
 0x19d   : > { %v2085_v4 = vld [vmem:[%s2658_s3 + $0xac] sm:$0xf]  ;;  %v1991_v10 = vor.u32 %v2084_v56, %v1988_v61 }
 0x19e   : > { %1403 = vmatpush.bf16.msrb.mxu2 %v1987_v60 }
 0x19f   : > { %1416 = vmatpush.bf16.msrb.mxu3 %v1991_v10 }
 0x1a1   : > { %v1122_v5 = vpop.f32.mrf.mxu2  ;;  %v1135_v8 = vpop.f32.mrf.mxu3 }
 0x1a3   : > { %1417 = vmatpush.bf16.msrb.mxu3 %v1975_v33 }
 0x1d8   : > { %v830_v41 = vpop.permute.xlu2 %829 }
 0x1d9   : > { %v842_v31 = vrot.slane %v830_v41, 4  ;;  %v847_v32 = vperm.slane %v830_v41, %v2691_v23  ;;  %v1999_v41 = vor.u32 %v2085_v4, %v1996_v12 }
 0x1db   : > { %v843_v42 = vsel %vm719_vm0, 0.0, %v842_v31  ;;  %v852_v25 = vrot.slane %v847_v32, 4  ;;  %v855_v52 = vsel %vm719_vm0, %v847_v32, %v854_v13  ;;  %v1970_v13 = vld [vmem:[%s2658_s3 + $0x80] sm:$0xf]  ;;  %1442 = vmatpush.bf16.msra.mxu1 %v1999_v41  ;;  %v2038_v41 = vld [vmem:[%s2658_s3 + $0x128] sm:$0xf] }
 0x1dc   : > { %v851_v35 = vperm.slane %v843_v42, %v2691_v23  ;;  %v863_v45 = vperm.slane %v855_v52, %v2670_v6  ;;  %v1971_v28 = vor.u32 %v2082_v14, %v1970_v13 }
 0x1dd   : > { %v853_v57 = vsel %vm719_vm0, %v852_v25, %v837_v11  ;;  %v1995_v11 = vor.u32 %v2087_v7, %v1994_v63 }
 0x1de   : > { %v859_v23 = vperm.slane %v853_v57, %v2670_v6  ;;  %v864_v0 = vrot.slane %v851_v35, 4  ;;  %v867_v1 = vsel %vm719_vm0, %v851_v35, %v866_v38  ;;  %v878_v3 = vrot.slane %v863_v45, 4  ;;  %1404 = vmatpush.bf16.msrb.mxu2 %v1971_v28 }
 0x1df   : > { %v875_v5 = vperm.slane %v867_v1, %v2670_v6  ;;  %v887_v8 = vadd.f32 %v2896_v51, %v863_v45  ;;  %1429 = vmatpush.bf16.msra.mxu0 %v1995_v11  ;;  %v1983_v38 = vor.u32 %v2081_v50, %v1980_v29  ;;  %v2095_v50 = vld [vmem:[%s2658_s3 + $0x134] sm:$0xf0]  ;;  %v2093_v29 = vld [vmem:[%s2658_s3 + $0x12c] sm:$0xf] }
 0x1e0   : > { %v865_v15 = vsel %vm719_vm0, %v864_v0, %v841_v16  ;;  %v876_v62 = vrot.slane %v859_v23, 4  ;;  %v879_v9 = vsel %vm719_vm0, 0.0, %v878_v3  ;;  %v885_v17 = vadd.f32 %v2896_v51, %v859_v23 }
 0x1e1   : > { %v871_v20 = vperm.slane %v865_v15, %v2670_v6  ;;  %v882_v21 = vrot.slane %v875_v5, 4  ;;  %v888_v22 = vadd.f32 %v2896_v51, %v879_v9  ;;  %v891_v37 = vadd.f32 %v2896_v51, %v875_v5  ;;  %1443 = vmatpush.bf16.msra.mxu1 %v1983_v38 }
 0x1e2   : > { %v877_v16 = vsel %vm719_vm0, 0.0, %v876_v62  ;;  %2195 = vtanh.f32 %v885_v17 }
 0x1e3   : > { %v880_v30 = vrot.slane %v871_v20, 4  ;;  %v883_v31 = vsel %vm719_vm0, 0.0, %v882_v21  ;;  %v886_v32 = vadd.f32 %v2896_v51, %v877_v16  ;;  %v889_v6 = vadd.f32 %v2896_v51, %v871_v20  ;;  %1430 = vmatpush.bf16.msra.mxu0 %v1979_v34  ;;  %v2094_v21 = vld [vmem:[%s2658_s3 + $0x12c] sm:$0xf0]  ;;  %v2032_v16 = vld [vmem:[%s2658_s3 + $0x130] sm:$0xf0] }
 0x1e4   : > { %2197 = vtanh.f32 %v887_v8  ;;  %v892_v46 = vadd.f32 %v2896_v51, %v883_v31  ;;  %v2014_v34 = vld [vmem:[%s2658_s3 + $0x100] sm:$0xf] }
 0x1e5   : > { %v881_v36 = vsel %vm719_vm0, 0.0, %v880_v30  ;;  %2199 = vtanh.f32 %v886_v32  ;;  %v2040_v30 = vld [vmem:[%s2658_s3 + $0x138] sm:$0xf0] }
 0x1e6   : > { %v890_v44 = vadd.f32 %v2896_v51, %v881_v36  ;;  %2201 = vtanh.f32 %v888_v22  ;;  %v2092_v22 = vld [vmem:[%s2658_s3 + $0x124] sm:$0xf]  ;;  %v2090_v36 = vld [vmem:[%s2658_s3 + $0x10c] sm:$0xf0]  ;;  %v2043_v38 = vor.u32 %v2093_v29, %v2040_v30 }
 0x1e7   : > { %2203 = vtanh.f32 %v889_v6  ;;  %v2031_v6 = vor.u32 %v2094_v21, %v2030_v43  ;;  %v2035_v33 = vor.u32 %v2092_v22, %v2032_v16 }
 0x1e8   : > { %v2196_v49 = vpop.eup %2195  ;;  %2205 = vtanh.f32 %v890_v44  ;;  %v2088_v44 = vld [vmem:[%s2658_s3 + $0x104] sm:$0xf] }
 0x1e9   : > { %2207 = vtanh.f32 %v891_v37  ;;  %v1175_v35 = vpack.c.bf16 %v2196_v49, %v2196_v49  ;;  %v2039_v37 = vor.u32 %v2095_v50, %v2038_v41  ;;  %v2022_v49 = vld [vmem:[%s2658_s3 + $0x108] sm:$0xf] }
 0x1ea   : > { %v2198_v42 = vpop.eup %2197  ;;  %2209 = vtanh.f32 %v892_v46  ;;  %v2016_v46 = vld [vmem:[%s2658_s3 + $0x110] sm:$0xf0] }
 0x1eb   : > { %v2200_v25 = vpop.eup %2199  ;;  %v1177_v52 = vpack.c.bf16 %v2198_v42, %v2198_v42  ;;  %v1200_v1 = vunpack.c.l.b16 %v1175_v35  ;;  %v2091_v42 = vld [vmem:[%s2658_s3 + $0x114] sm:$0xf0]  ;;  %v2019_v35 = vor.u32 %v2088_v44, %v2016_v46 }
 0x1ec   : > { %v2202_v53 = vpop.eup %2201  ;;  %v1176_v45 = vpack.c.bf16 %v2200_v25, %v2200_v25  ;;  %v2089_v25 = vld [vmem:[%s2658_s3 + $0x10c] sm:$0xf] }
 0x1ed   : > { %v2204_v54 = vpop.eup %2203  ;;  %v1178_v55 = vpack.c.bf16 %v2202_v53, %v2202_v53  ;;  %v2936_v56 = vunpack.c.l.b16 %v1177_v52  ;;  %v2024_v52 = vld [vmem:[%s2658_s3 + $0x118] sm:$0xf0]  ;;  %v2015_v53 = vor.u32 %v2090_v36, %v2014_v34 }
 0x1ee   : > { %v2206_v51 = vpop.eup %2205  ;;  %v1179_v57 = vpack.c.bf16 %v2204_v54, %v2204_v54  ;;  %v2938_v60 = vunpack.c.l.b16 %v1176_v45  ;;  %v2023_v45 = vor.u32 %v2091_v42, %v2022_v49  ;;  %v2027_v54 = vor.u32 %v2089_v25, %v2024_v52 }
 0x1ef   : > { %v2208_v61 = vpop.eup %2207  ;;  %v1180_v63 = vpack.c.bf16 %v2206_v51, %v2206_v51  ;;  %v2940_v7 = vunpack.c.l.b16 %v1178_v55  ;;  %v1210_v10 = vrot.slane %v2936_v56, 6  ;;  %v1470_v55 = vrot.slane %v1200_v1, 1 }
 0x1f0   : > { %v2210_v23 = vpop.eup %2209  ;;  %v1181_v0 = vpack.c.bf16 %v2208_v61, %v2208_v61  ;;  %v2942_v3 = vunpack.c.l.b16 %v1179_v57  ;;  %v1208_v4 = vrot.slane %v2938_v60, 7  ;;  %v1472_v57 = vrot.slane %v2936_v56, 7 }
 0x1f1   : > { %v1182_v5 = vpack.c.bf16 %v2210_v23, %v2210_v23  ;;  %v2945_v8 = vunpack.c.l.b16 %v1180_v63  ;;  %v1212_v13 = vrot.slane %v2940_v7, 5  ;;  %v1471_v51 = vsel %vm1047_vm3, %v2938_v60, %v1470_v55 }
 0x1f2   : > { %v2948_v11 = vunpack.c.l.b16 %v1181_v0  ;;  %v1209_v12 = vsel %vm1047_vm3, %v1208_v4, %v1200_v1  ;;  %v1214_v62 = vrot.slane %v2942_v3, 4  ;;  %v1473_v61 = vsel %vm1050_vm5, %v1472_v57, %v1471_v51 }
 0x1f3   : > { %v2952_v14 = vunpack.c.l.b16 %v1182_v5  ;;  %v1211_v15 = vsel %vm1050_vm5, %v1210_v10, %v1209_v12  ;;  %v1216_v9 = vrot.slane %v2945_v8, 3  ;;  %v1474_v63 = vrot.slane %v2940_v7, 6  ;;  %v1596_v12 = vld [vmem:[%s2655_s27 + $0x18] sm:$0x1f] }
 0x1f4   : > { %v1213_v17 = vsel %vm1053_vm6, %v1212_v13, %v1211_v15  ;;  %v1218_v19 = vrot.slane %v2948_v11, 2  ;;  %v1476_v23 = vrot.slane %v2942_v3, 5  ;;  %v1353_v0 = vpack.c.b16 %v2838_v26, %v2838_v26  ;;  %v1594_v13 = vld [vmem:[%s2655_s27 + $0x8] sm:$0x1f] }
 0x1f5   : > { %v1215_v20 = vsel %vm1056_vm7, %v1214_v62, %v1213_v17  ;;  %v1220_v27 = vrot.slane %v2952_v14, 1  ;;  %v1475_v1 = vsel %vm1053_vm6, %v1474_v63, %v1473_v61  ;;  %v1478_v60 = vrot.slane %v2945_v8, 4  ;;  %v1595_v8 = vld [vmem:[%s2655_s27 + $0x10] sm:$0x1f]  ;;  %v1593_v62 = vld [vmem:[%s2655_s27] sm:$0x1f] }
 0x1f6   : > { %v1217_v24 = vsel %vm1059_vm8, %v1216_v9, %v1215_v20  ;;  %v1477_v56 = vsel %vm1056_vm7, %v1476_v23, %v1475_v1  ;;  %v1480_v26 = vrot.slane %v2948_v11, 3  ;;  %v1482_v4 = vrot.slane %v2952_v14, 2  ;;  %s1829_s27 = sshll.u32 %s2564_s18, 2  ;;  %s566_s18 = scalar_lea.vmem [#allocation10], %s2644_s22 }
 0x1f7   : > { %v1219_v28 = vsel %vm1062_vm9, %v1218_v19, %v1217_v24  ;;  %v1479_v7 = vsel %vm1059_vm8, %v1478_v60, %v1477_v56  ;;  %v1599_v11 = vmul.f32 %v1595_v8, %v2846_v39  ;;  %v1600_v15 = vmul.f32 %v1596_v12, %v2849_v40  ;;  %p569_p6 = scmp.lt.s32.totalorder %s1829_s27, 7  ;;  %s1675_s20 = sshll.u32 %s566_s18, 4  ;;  %s1676_s20 = int_to_ptr.vmem [resolvable:$true] %s1675_s20 }
 0x1f8   : > { %v1221_v31 = vsel %vm1065_vm10, %v1220_v27, %v1219_v28  ;;  %v1481_v3 = vsel %vm1062_vm9, %v1480_v26, %v1479_v7  ;;  %v1598_v14 = vmul.f32 %v1594_v13, %v2857_v48  ;;  %v1597_v43 = vmul.f32 %v1593_v62, %v2854_v47  ;;  %s2345_s22 = sshra.s32 %s1678_s9, 4  ;;  %s2346_s22 = int_to_ptr.hbm [resolvable:$true] %s2345_s22 }
 0x1f9   : > { %v1222_v32 = vpack.c.b16 %v1221_v31, %v1221_v31  ;;  %v1483_v5 = vsel %vm1065_vm10, %v1482_v4, %v1481_v3  ;;  %v1616_v9 = vsel %vm1601_vm11, %v1599_v11, 0.0  ;;  %v1623_v17 = vsel %vm1601_vm11, %v1600_v15, 0.0  ;;  %s3133_s27 = smov (!%p569_p6, %s1829_s27), 7  ;;  %s2347_s7 = scalar_lea.hbm %s2346_s22, 32 }
 0x1fa   : > { %v1484_v10 = vpack.c.b16 %v1483_v5, %v1483_v5  ;;  %v1609_v19 = vsel %vm1601_vm11, %v1598_v14, 0.0  ;;  %v1617_v20 = vrot.slane %v1616_v9, 4  ;;  %v1624_v21 = vrot.slane %v1623_v17, 4  ;;  %s571_s13 = scalar_lea.vmem %s3121_s29, %s3133_s27  ;;  %p2348_p10 = scmp.ne.s32.totalorder %s2346_s22, %s2347_s7 }
 0x1fb   : > { %1956 = vmatmul.msk.bf16.vlgmr.msra.gmra.mxu2 %vm758_vm4, %v1222_v32  ;;  %1957 = vmatmul.msk.bf16.vlgmr.msra.gmra.mxu3 %vm758_vm4, %v1222_v32  ;;  %v1610_v22 = vrot.slane %v1609_v19, 4  ;;  %v1602_v24 = vsel %vm1601_vm11, %v1597_v43, 0.0  ;;  %v1320_v4 = vperm.slane %v2846_v39, 3  ;;  %v1321_v5 = vperm.slane %v2849_v40, 3  ;;  %v1592_v11 = vld [vmem:[%s571_s13] sm:$0xf]  ;;  %p2352_p5 = scmp.lt.s32.totalorder %s2346_s22, %s3122_s10  ;;  %p2353_p7 = scmp.lt.s32.totalorder %s2351_s23, %s2347_s7 }
 0x1fc   : > { %1958 = vmatmul.msk.bf16.vlgmr.msrb.gmra.mxu0 %vm758_vm4, %v1222_v32  ;;  %1959 = vmatmul.msk.bf16.vlgmr.msrb.gmra.mxu1 %vm758_vm4, %v1222_v32  ;;  %v1618_v27 = vadd.f32 %v1617_v20, %v1616_v9  ;;  %v1625_v16 = vadd.f32 %v1624_v21, %v1623_v17  ;;  %v1603_v41 = vrot.slane %v1602_v24, 4  ;;  %v1451_v12 = vperm.slane %v2846_v39, 2  ;;  %p2349_p1 = pnand %p2348_p10, %p2581_p11 }
 0x1fd   : > { %1534 = vmatpush.bf16.msra.mxu2 %v2031_v6  ;;  %1547 = vmatpush.bf16.msra.mxu3 %v2035_v33  ;;  %v1611_v28 = vadd.f32 %v1610_v22, %v1609_v19  ;;  %v1452_v13 = vperm.slane %v2849_v40, 2  ;;  %v1318_v9 = vperm.slane %v2854_v47, 3  ;;  %v1319_v17 = vperm.slane %v2857_v48, 3  ;;  %p2354_p3 = por %p2353_p7, %p2352_p5 }
 0x1fe   : > { %1560 = vmatpush.bf16.msrb.mxu0 %v2039_v37  ;;  %1573 = vmatpush.bf16.msrb.mxu1 %v2043_v38  ;;  %v1619_v30 = vrot.slane %v1618_v27, 2  ;;  %v1626_v31 = vrot.slane %v1625_v16, 2  ;;  %v1604_v32 = vadd.f32 %v1603_v41, %v1602_v24  ;;  %v1582_v24 = vperm.slane %v2846_v39, 4  ;;  %p2350_p2 = pneg %p2349_p1 }
 0x1ff   : > { %v1612_v6 = vrot.slane %v1611_v28, 2  ;;  %v1450_v41 = vperm.slane %v2857_v48, 2 }
 0x200   : > { %v1605_v36 = vrot.slane %v1604_v32, 2  ;;  %v1620_v38 = vadd.f32 %v1619_v30, %v1618_v27  ;;  %v1627_v44 = vadd.f32 %v1626_v31, %v1625_v16  ;;  %v1583_v27 = vperm.slane %v2849_v40, 4  ;;  %p2355_p4 = pnand %p2354_p3, %p2350_p2 }
 0x201   : > { %1535 = vmatpush.bf16.msra.mxu2 %v2015_v53  ;;  %1548 = vmatpush.bf16.msra.mxu3 %v2019_v35  ;;  %v1613_v37 = vadd.f32 %v1612_v6, %v1611_v28  ;;  %v1449_v16 = vperm.slane %v2854_v47, 2 }
 0x202   : > { %1561 = vmatpush.bf16.msrb.mxu0 %v2023_v45  ;;  %1574 = vmatpush.bf16.msrb.mxu1 %v2027_v54  ;;  %v1606_v42 = vadd.f32 %v1605_v36, %v1604_v32  ;;  %v1621_v52 = vrot.slane %v1620_v38, 1  ;;  %v1628_v53 = vrot.slane %v1627_v44, 1 }
 0x203   : > { %v1614_v25 = vrot.slane %v1613_v37, 1 }
 0x204   : > { %v1607_v54 = vrot.slane %v1606_v42, 1  ;;  %v1622_v51 = vadd.f32 %v1621_v52, %v1620_v38  ;;  %v1629_v57 = vadd.f32 %v1628_v53, %v1627_v44 }
 0x205   : > { %v1615_v55 = vadd.f32 %v1614_v25, %v1613_v37 }
 0x206   : > { %v1608_v23 = vadd.f32 %v1607_v54, %v1606_v42  ;;  %v1635_v1 = vrot.slane %v1622_v51, 6  ;;  %v1636_v60 = vrot.slane %v1629_v57, 5  ;;  %v1581_v42 = vperm.slane %v2857_v48, 4 }
 0x208   : > { %v1639_v3 = vsel %vm1050_vm5, %v1635_v1, %v1636_v60 }
 0x20b   : > { %2000 = vmatmul.msk.bf16.vlgmr.msrb.gmra.mxu2 %vm758_vm4, %v1353_v0  ;;  %2001 = vmatmul.msk.bf16.vlgmr.msrb.gmra.mxu3 %vm758_vm4, %v1353_v0 }
 0x20c   : > { %2002 = vmatmul.msk.bf16.vlgmr.msra.gmra.mxu0 %vm758_vm4, %v1353_v0  ;;  %2003 = vmatmul.msk.bf16.vlgmr.msra.gmra.mxu1 %vm758_vm4, %v1353_v0  ;;  %v1634_v0 = vrot.slane %v1615_v55, 7 }
 0x20e   : > { %v1638_v26 = vsel %vm1637_vm12, %v1608_v23, %v1634_v0 }
 0x20f   : > { %v1641_v15 = vsel %vm1640_vm13, %v1638_v26, %v1639_v3 }
 0x210   : > { %v1643_v43 = vadd.f32 %v1641_v15, %v1592_v11 }
 0x212   : > { %v1647_v32 = vperm.slane %v1643_v43, 2  ;;  %v1648_v36 = vperm.slane %v1643_v43, 3  ;;  %v1646_v54 = vperm.slane %v1643_v43, 1 }
 0x21b   : > { %2044 = vmatmul.msk.bf16.vlgmr.msra.gmra.mxu2 %vm758_vm4, %v1484_v10  ;;  %2045 = vmatmul.msk.bf16.vlgmr.msra.gmra.mxu3 %vm758_vm4, %v1484_v10 }
 0x21c   : > { %2046 = vmatmul.msk.bf16.vlgmr.msrb.gmra.mxu0 %vm758_vm4, %v1484_v10  ;;  %2047 = vmatmul.msk.bf16.vlgmr.msrb.gmra.mxu1 %vm758_vm4, %v1484_v10 }
 0x279   : > { %v1301_v50 = vpop.f32.mrf.mxu0  ;;  %v1314_v29 = vpop.f32.mrf.mxu1 }
 0x27a   : > { %v1324_v14 = vmul.f32 %v1320_v4, %v1301_v50  ;;  %v1325_v62 = vmul.f32 %v1321_v5, %v1314_v29 }
 0x27c   : > { %v1328_v28 = vadd.f32 %v1324_v14, %v2865_v58  ;;  %v1329_v50 = vadd.f32 %v1325_v62, %v2867_v59 }
 0x27e   : > { %v1275_v33 = vpop.f32.mrf.mxu2  ;;  %v1288_v34 = vpop.f32.mrf.mxu3 }
 0x27f   : > { %v1322_v29 = vmul.f32 %v1318_v9, %v1275_v33  ;;  %v1323_v30 = vmul.f32 %v1319_v17, %v1288_v34 }
 0x281   : > { %v1303_v46 = vpop.f32.mrf.mxu0  ;;  %v1316_v49 = vpop.f32.mrf.mxu1  ;;  %v1326_v33 = vadd.f32 %v1322_v29, %v2869_v2  ;;  %v1327_v34 = vadd.f32 %v1323_v30, %v2871_v18 }
 0x282   : > { %v1580_v49 = vperm.slane %v2854_v47, 4 }
 0x286   : > { %v1277_v35 = vpop.f32.mrf.mxu2  ;;  %v1290_v45 = vpop.f32.mrf.mxu3 }
 0x287   : > { %v1645_v35 = vperm.slane %v1643_v43, 0 }
 0x289   : > { %v1432_v61 = vpop.f32.mrf.mxu0  ;;  %v1445_v63 = vpop.f32.mrf.mxu1 }
 0x28a   : > { %v1455_v19 = vmul.f32 %v1451_v12, %v1432_v61  ;;  %v1456_v20 = vmul.f32 %v1452_v13, %v1445_v63 }
 0x28c   : > { %v1459_v37 = vadd.f32 %v1455_v19, %v1328_v28  ;;  %v1460_v38 = vadd.f32 %v1456_v20, %v1329_v50 }
 0x28e   : > { %v1406_v56 = vpop.f32.mrf.mxu2  ;;  %v1419_v7 = vpop.f32.mrf.mxu3 }
 0x28f   : > { %v1453_v40 = vmul.f32 %v1449_v16, %v1406_v56  ;;  %v1454_v46 = vmul.f32 %v1450_v41, %v1419_v7 }
 0x291   : > { %v1434_v10 = vpop.f32.mrf.mxu0  ;;  %v1447_v8 = vpop.f32.mrf.mxu1  ;;  %v1457_v47 = vadd.f32 %v1453_v40, %v1326_v33  ;;  %v1458_v48 = vadd.f32 %v1454_v46, %v1327_v34 }
 0x296   : > { %v1408_v21 = vpop.f32.mrf.mxu2  ;;  %v1421_v22 = vpop.f32.mrf.mxu3 }
 0x299   : > { %v1563_v31 = vpop.f32.mrf.mxu0  ;;  %v1576_v6 = vpop.f32.mrf.mxu1 }
 0x29a   : > { %v1586_v39 = vmul.f32 %v1582_v24, %v1563_v31  ;;  %v1587_v44 = vmul.f32 %v1583_v27, %v1576_v6 }
 0x29c   : > { %v1590_v58 = vadd.f32 %v1586_v39, %v1459_v37  ;;  %v1591_v59 = vadd.f32 %v1587_v44, %v1460_v38 }
 0x29e   : > { %v1655_v25 = vadd.f32 %v1647_v32, %v1590_v58  ;;  %v1656_v52 = vadd.f32 %v1648_v36, %v1591_v59  ;;  %v1537_v53 = vpop.f32.mrf.mxu2  ;;  %v1550_v45 = vpop.f32.mrf.mxu3 }
 0x29f   : > { %v1584_v55 = vmul.f32 %v1580_v49, %v1537_v53  ;;  %v1585_v51 = vmul.f32 %v1581_v42, %v1550_v45 }
 0x2a0   : > { %1659 = vst [vmem:[%s566_s18 + $0x10] sm:$0xff] %v1655_v25 }
 0x2a1   : > { %1660 = vst [vmem:[%s566_s18 + $0x18] sm:$0xff] %v1656_v52  ;;  %v1588_v2 = vadd.f32 %v1584_v55, %v1457_v47  ;;  %v1589_v18 = vadd.f32 %v1585_v51, %v1458_v48  ;;  %v1565_v57 = vpop.f32.mrf.mxu0  ;;  %v1578_v61 = vpop.f32.mrf.mxu1 }
 0x2a3   : > { %v1653_v63 = vadd.f32 %v1645_v35, %v1588_v2  ;;  %v1654_v23 = vadd.f32 %v1646_v54, %v1589_v18 }
 0x2a5   : > { %1657 = vst [vmem:[%s566_s18] sm:$0xff] %v1653_v63 }
 0x2a6   : > { %1658 = vst [vmem:[%s566_s18 + $0x8] sm:$0xff] %v1654_v23  ;;  %v1539_v0 = vpop.f32.mrf.mxu2  ;;  %v1552_v1 = vpop.f32.mrf.mxu3 }
 0x2a7   : > { %2358 = shalt.err (!%p2355_p4)
}
 0x2a8   : > { %2109 = dma.vmem_to_hbm [thread:$0]  (%p2581_p11), %s1676_s20, 512, %s1678_s9, %s1662_s25  }
 0x2a9 PF: > { %s3124_s24 = sld [smem:[#allocation15_spill]]  ;;  %p3126_p9 = scmp.ge.s32.totalorder %s2405_s28, 2 }
 0x2ab   : > { %p2126_p13 = pnand %p3126_p9, %p2585_p12 }
 0x2ad   : > { %p2127_p8 = pneg %p2126_p13 }
 0x2af   : > { %s1689_s15 = sand.u32 1, %s3124_s24  }
 0x2b0   : > { %s1690_s29 = scalar_lea.sflag [#allocation4], %s1689_s15 }
 0x2b1   : > { %2388 = dma.done.wait (%p2127_p8), %s1690_s29, 512  }
 0x2b2   : > { %2390 = vsyncadd (%p2127_p8), %s1690_s29, 4294966784  ;;  %s3127_s28 = sld [smem:[#allocation17_spill]]  ;;  %s3130_s25 = smov %s2397_s26 }
 0x2b3   : > { %s3128_s13 = sld [smem:[#allocation16_spill]] }
 0x2b4   : > { %s3129_s27 = sld [smem:[#allocation18_spill]] }
 0x2b8   : > { %p30_p0 = scmp.ge.s32.totalorder %s3127_s28, 4  }
 0x2b9   : > { %s3131_s26 = smov %s3128_s13 }
 0x2ba   :  { %32 = sbr.rel (!%p30_p0) target bundleno = 16 (0x10), region = 153 }
 0x2bf   :  { %1696 = vsyncpa [#allocation3], 1 }
 0x2c0   :  { %1698 = vsyncpa [#allocation3 + $0x1], 1 }
 0x2c1   :  { %1699 = vsyncpa [#allocation6], 1 }
 0x2c2   :  { %1701 = vsyncpa [#allocation6 + $0x1], 1 }
 0x2c3   :  { %1702 = vsyncpa [#allocation9], 1 }
 0x2c4   :  { %1704 = vsyncpa [#allocation9 + $0x1], 1 }
 0x2c5   :  { %1705 = vsyncpa [#allocation4], 1 }
 0x2c6   :  { %1707 = vsyncpa [#allocation4 + $0x1], 1 }

</bundles_post_ra>
